<compile_context>
chip_gen: v6e
topology: v6e:2x2x1
jax: 0.10.0
libtpu: 0.0.40
codegen_flags: <defaults>
</compile_context>

<pallas_src>
import functools

import numpy as np
import jax
import jax.numpy as jnp
from jax.experimental import pallas as pl
from jax.experimental.pallas import tpu as pltpu


# ------------------------- fused OSNet forward kernel -------------------------

def _osnet_kernel(patches_ref, w1_ref, b1_ref,
                  w2a_ref, b2a_ref, w2b_ref, b2b_ref, pool1_ref, tsam_ref,
                  w3a_ref, b3a_ref, w3b_ref, b3b_ref, pool2_ref,
                  camw1_ref, camw2_ref,
                  w4_ref, b4_ref, w5_ref, b5_ref, pool3_ref,
                  w6_ref, b6_ref, out_ref, *, n_taps):
    f32, bf16 = jnp.float32, jnp.bfloat16

    def mm(w_ref, x, b_ref=None, act=None):
        # (Cout, Cin) @ (Cin, M): bf16 operands, f32 MXU accumulate, f32
        # epilogue; activations handed to the next matmul in bf16.
        y = jnp.dot(w_ref[...], x, preferred_element_type=f32)
        if b_ref is not None:
            y = y + b_ref[...]
        if act == "relu":
            y = jnp.maximum(y, 0.0)
        return y.astype(bf16)

    def pool(x, p_ref):
        # Linear spatial pooling as a per-sample (hw_in, hw_out) matmul.
        return jnp.dot(x, p_ref[...], preferred_element_type=f32).astype(bf16)

    # ---- conv1 (7x7/s2 + BN + ReLU) fused with MaxPool2d(3, s=2, p=1):
    # one matmul over the 9 tap-column groups, then an elementwise max.
    z = mm(w1_ref, patches_ref[0], b1_ref, "relu")          # (C0, 9*hw_m)
    hw_m = z.shape[1] // n_taps
    x = z[:, 0:hw_m]
    for t in range(1, n_taps):
        x = jnp.maximum(x, z[:, t * hw_m:(t + 1) * hw_m])    # (C0, hw_m)

    # ---- conv2 stage (OSBlock stand-in + Conv1x1) + AvgPool2d(2,2).
    x = mm(w2a_ref, x, b2a_ref, "relu")
    x = mm(w2b_ref, x, b2b_ref, "relu")
    x = pool(x, pool1_ref)                                   # (C1, hw2)

    # ---- SAM: channel max / mean, 7x7 conv folded into per-sample
    # (hw2, hw2) operators (stacked in one array => one DMA).
    hw2 = tsam_ref.shape[1]
    xf = x.astype(f32)
    att_max = jnp.max(xf, axis=0, keepdims=True).astype(bf16)    # (1, hw2)
    att_mean = jnp.mean(xf, axis=0, keepdims=True).astype(bf16)  # (1, hw2)
    presig = (jnp.dot(att_max, tsam_ref[0:hw2, :],
                      preferred_element_type=f32)
              + jnp.dot(att_mean, tsam_ref[hw2:2 * hw2, :],
                        preferred_element_type=f32))
    x = (x * jax.nn.sigmoid(presig)).astype(bf16)

    # ---- conv3 stage + AvgPool2d(2,2).
    x = mm(w3a_ref, x, b3a_ref, "relu")
    x = mm(w3b_ref, x, b3b_ref, "relu")
    x = pool(x, pool2_ref)                                   # (C2, hw3)

    # ---- CAM: per-sample global max / avg pool (plain lane reductions now
    # that the grid is per-sample), shared 2-layer MLP, sigmoid gate.
    xf = x.astype(f32)
    mx = jnp.max(xf, axis=1, keepdims=True).astype(bf16)     # (C2, 1)
    av = jnp.mean(xf, axis=1, keepdims=True).astype(bf16)    # (C2, 1)
    logits = (jnp.dot(camw2_ref[...], mm(camw1_ref, mx, None, "relu"),
                      preferred_element_type=f32)
              + jnp.dot(camw2_ref[...], mm(camw1_ref, av, None, "relu"),
                        preferred_element_type=f32))         # (C2, 1)
    x = (x * jax.nn.sigmoid(logits)).astype(bf16)

    # ---- conv4 (block stand-in) and conv5 (Conv1x1 + BN + ReLU).
    x = mm(w4_ref, x, b4_ref, "relu")
    f = mm(w5_ref, x, b5_ref, "relu")                        # (C3, hw3)

    # ---- parts_avgpool((parts,1)) + global_avgpool(1) as ONE pooling matmul;
    # Dropout(p=0.5) is the identity in eval mode.
    v = pool(f, pool3_ref)                                   # (C3, parts+1)

    # ---- conv6: DimReduceLayer (1x1 conv + BN + hardswish), then
    # F.normalize(p=2, dim=channel) per (sample, part) column.
    y = jnp.dot(w6_ref[...], v, preferred_element_type=f32) + b6_ref[...]
    y = y * jnp.clip(y + 3.0, 0.0, 6.0) * (1.0 / 6.0)        # hardswish
    nrm = jnp.sqrt(jnp.sum(y * y, axis=0, keepdims=True))
    out_ref[0] = y / jnp.maximum(nrm, 1e-12)


# ----------------------------- host-side layout glue -----------------------------

def stem_maxpool_patches(x):
    """(N,3,H,W) -> (N, 3*49+1, 9*Hm*Wm) bf16 column slab for the fused
    conv1+maxpool.  Columns are grouped tap-major: for maxpool tap (ti,tj) and
    output position (p,q) the column holds the 7x7 stem patch at stem position
    (2p+ti-1, 2q+tj-1); the last row is a 0/1 out-of-range indicator that a
    -1e8 weight column turns into a 0 contribution after the ReLU."""
    n, c, h, w = x.shape
    h1 = (h + 2 * 3 - 7) // 2 + 1
    w1 = (w + 2 * 3 - 7) // 2 + 1
    xp = jnp.pad(x, ((0, 0), (0, 0), (3, 3), (3, 3)))
    cols = []
    for a in range(7):
        for b in range(7):
            cols.append(xp[:, :, a:a + 2 * h1:2, b:b + 2 * w1:2])
    cols = jnp.stack(cols, axis=2).reshape(n, c * 49, h1, w1)
    # maxpool padding=1 ring + validity indicator row.
    colsp = jnp.pad(cols, ((0, 0), (0, 0), (1, 1), (1, 1)))
    ind = jnp.pad(jnp.zeros((n, 1, h1, w1), x.dtype),
                  ((0, 0), (0, 0), (1, 1), (1, 1)), constant_values=1.0)
    aug = jnp.concatenate([colsp, ind], axis=1)        # (n, 148, h1+2, w1+2)
    hm = (h1 + 2 * 1 - 3) // 2 + 1
    wm = (w1 + 2 * 1 - 3) // 2 + 1
    taps = []
    for ti in range(3):
        for tj in range(3):
            taps.append(aug[:, :, ti:ti + 2 * hm:2, tj:tj + 2 * wm:2]
                        .reshape(n, c * 49 + 1, hm * wm))
    return jnp.concatenate(taps, axis=2).astype(jnp.bfloat16), hm, wm


# ----------------------------- operator precomputation -----------------------------

def _avgpool2x2_matrix(h, w):
    ho, wo = h // 2, w // 2
    P = np.zeros((h * w, ho * wo), np.float32)
    for i in range(ho):
        for j in range(wo):
            for di in range(2):
                for dj in range(2):
                    P[(2 * i + di) * w + 2 * j + dj, i * wo + j] = 0.25
    return P


def _sam_operator(w_sam, h, w):
    """Per-sample operators for the SAM 7x7 (2->1, pad 3, no bias) conv,
    stacked as (2*h*w, h*w): rows [0,hw) act on the channel-max map,
    rows [hw,2hw) on the channel-mean map."""
    ws = np.asarray(w_sam).reshape(2, 7, 7)
    pad = 3
    T = np.zeros((2, h * w, h * w), np.float32)
    for ch in range(2):
        for ho in range(h):
            for wo in range(w):
                for i in range(7):
                    for j in range(7):
                        hi, wi = ho + i - pad, wo + j - pad
                        if 0 <= hi < h and 0 <= wi < w:
                            T[ch, hi * w + wi, ho * w + wo] = ws[ch, i, j]
    return np.concatenate([T[0], T[1]], axis=0)


def _parts_pool_matrix(h, w, parts):
    hw = h * w
    rp = h // parts
    P = np.zeros((hw, parts + 1), np.float32)
    for p in range(parts):
        for i in range(rp):
            for j in range(w):
                P[(p * rp + i) * w + j, p] = 1.0 / (rp * w)
    P[:, parts] = 1.0 / hw
    return P


# ----------------------------- parameters -----------------------------

def init_params(key, channels=(8, 16, 32, 64), reduce_dim=32):
    keys = iter(jax.random.split(key, 32))

    def conv_w(cout, cin, kh, kw):
        fan_out = cout * kh * kw                      # kaiming_normal fan_out
        std = (2.0 / fan_out) ** 0.5
        return jax.random.normal(next(keys), (cout, cin, kh, kw),
                                 jnp.float32) * std

    def bn(c):
        # eval-mode BatchNorm folded to (scale, bias):
        # gamma=1, beta=0, running_mean=0, running_var=1, eps=1e-5
        return (jnp.ones((c,), jnp.float32) / jnp.sqrt(1.0 + 1e-5),
                jnp.zeros((c,), jnp.float32))

    c0, c1, c2, c3 = channels
    p = {}
    p["conv1_w"] = conv_w(c0, 3, 7, 7);      p["conv1_bn"] = bn(c0)
    p["conv2_blk_w"] = conv_w(c1, c0, 1, 1); p["conv2_blk_bn"] = bn(c1)
    p["conv2_red_w"] = conv_w(c1, c1, 1, 1); p["conv2_red_bn"] = bn(c1)
    p["sam_w"] = conv_w(1, 2, 7, 7)
    p["conv3_blk_w"] = conv_w(c2, c1, 1, 1); p["conv3_blk_bn"] = bn(c2)
    p["conv3_red_w"] = conv_w(c2, c2, 1, 1); p["conv3_red_bn"] = bn(c2)
    p["cam_w1"] = conv_w(c2 // 2, c2, 1, 1)
    p["cam_w2"] = conv_w(c2, c2 // 2, 1, 1)
    p["conv4_blk_w"] = conv_w(c3, c2, 1, 1); p["conv4_blk_bn"] = bn(c3)
    p["conv5_w"] = conv_w(c3, c3, 1, 1);     p["conv5_bn"] = bn(c3)
    p["conv6_w"] = conv_w(reduce_dim, c3, 1, 1); p["conv6_bn"] = bn(reduce_dim)
    return p


def prepare_inference(params, h, w, parts=4):
    """Once per spatial shape: fold BN into bf16 weights and precompute the
    per-sample pooling / SAM operators consumed by the fused kernel."""
    def fold(wk, bnk):
        wt = np.asarray(params[wk])
        s, b = (np.asarray(v) for v in params[bnk])
        cout = wt.shape[0]
        return wt.reshape(cout, -1) * s[:, None], b.reshape(cout, 1)

    h1 = (h + 2 * 3 - 7) // 2 + 1
    w1 = (w + 2 * 3 - 7) // 2 + 1
    hm = (h1 + 2 * 1 - 3) // 2 + 1
    wm = (w1 + 2 * 1 - 3) // 2 + 1
    assert hm % 2 == 0 and wm % 2 == 0
    h2, w2 = hm // 2, wm // 2
    assert h2 % 2 == 0 and w2 % 2 == 0
    h3, w3 = h2 // 2, w2 // 2
    assert h3 % parts == 0

    prep = {}

    def put(name, wk, bnk):
        wf, bf = fold(wk, bnk)
        prep[name] = jnp.asarray(wf, jnp.bfloat16)
        prep["b" + name[1:]] = jnp.asarray(bf, jnp.float32)

    # stem weight gets an extra -1e8 column matched to the indicator row.
    w1f, b1f = fold("conv1_w", "conv1_bn")
    w1aug = np.concatenate(
        [w1f, np.full((w1f.shape[0], 1), -1e8, np.float32)], axis=1)
    prep["w1"] = jnp.asarray(w1aug, jnp.bfloat16)
    prep["b1"] = jnp.asarray(b1f, jnp.float32)

    put("w2a", "conv2_blk_w", "conv2_blk_bn")
    put("w2b", "conv2_red_w", "conv2_red_bn")
    put("w3a", "conv3_blk_w", "conv3_blk_bn")
    put("w3b", "conv3_red_w", "conv3_red_bn")
    put("w4", "conv4_blk_w", "conv4_blk_bn")
    put("w5", "conv5_w", "conv5_bn")
    put("w6", "conv6_w", "conv6_bn")

    prep["camw1"] = jnp.asarray(
        np.asarray(params["cam_w1"]).reshape(params["cam_w1"].shape[0], -1),
        jnp.bfloat16)
    prep["camw2"] = jnp.asarray(
        np.asarray(params["cam_w2"]).reshape(params["cam_w2"].shape[0], -1),
        jnp.bfloat16)

    prep["pool1"] = jnp.asarray(_avgpool2x2_matrix(hm, wm), jnp.bfloat16)
    prep["pool2"] = jnp.asarray(_avgpool2x2_matrix(h2, w2), jnp.bfloat16)
    prep["pool3"] = jnp.asarray(_parts_pool_matrix(h3, w3, parts),
                                jnp.bfloat16)
    prep["tsam"] = jnp.asarray(_sam_operator(params["sam_w"], h2, w2),
                               jnp.bfloat16)
    return prep


# ----------------------------- OSNet forward -----------------------------

def _full_spec(a):
    nd = a.ndim
    return pl.BlockSpec(a.shape, lambda s, _nd=nd: (0,) * _nd)


@functools.partial(jax.jit, static_argnames=("parts",))
def osnet_forward(prep, x, *, parts=4):
    """Eval forward: L2-normalized flattened part features, (N, R*(parts+1))."""
    n = x.shape[0]
    patches, hm, wm = stem_maxpool_patches(x)
    assert prep["pool1"].shape[0] == hm * wm
    r = prep["w6"].shape[0]

    order = ("w1", "b1", "w2a", "b2a", "w2b", "b2b", "pool1", "tsam",
             "w3a", "b3a", "w3b", "b3b", "pool2", "camw1", "camw2",
             "w4", "b4", "w5", "b5", "pool3", "w6", "b6")
    weights = [prep[k] for k in order]

    in_specs = [pl.BlockSpec((1,) + patches.shape[1:], lambda s: (s, 0, 0))]
    in_specs += [_full_spec(a) for a in weights]

    out = pl.pallas_call(
        functools.partial(_osnet_kernel, n_taps=9),
        out_shape=jax.ShapeDtypeStruct((n, r, parts + 1), jnp.float32),
        grid=(n,),
        in_specs=in_specs,
        out_specs=pl.BlockSpec((1, r, parts + 1), lambda s: (s, 0, 0)),
        compiler_params=pltpu.CompilerParams(
            dimension_semantics=("parallel",)),
    )(patches, *weights)

    # (N, R, parts+1) row-major == torch's (N, R, parts+1, 1).view(N, -1).
    return out.reshape(n, r * (parts + 1))


# ----------------------------- main -----------------------------

if __name__ == "__main__":
    key = jax.random.PRNGKey(0)
    pkey, xkey = jax.random.split(key)
    channels = (8, 16, 32, 64)
    reduce_dim = 32
    parts = 4

    params = init_params(pkey, channels=channels, reduce_dim=reduce_dim)
    x = jax.random.normal(xkey, (2, 3, 64, 64), jnp.float32)   # NCHW input

    prep = prepare_inference(params, h=x.shape[2], w=x.shape[3], parts=parts)
    out = osnet_forward(prep, x, parts=parts)
    out = jax.block_until_ready(out)
    assert out.shape == (2, reduce_dim * (parts + 1))
    assert bool(jnp.all(jnp.isfinite(out)))
    print("KERNEL_OK")
</pallas_src>

<mosaic_0001>
module attributes {stable_mosaic.version = 11 : i64} {
  func.func @_osnet_kernel(%arg0: i32, %arg1: memref<1x148x2304xbf16, #tpu.memory_space<vmem>>, %arg2: memref<8x148xbf16, #tpu.memory_space<vmem>>, %arg3: memref<8x1xf32, #tpu.memory_space<vmem>>, %arg4: memref<16x8xbf16, #tpu.memory_space<vmem>>, %arg5: memref<16x1xf32, #tpu.memory_space<vmem>>, %arg6: memref<16x16xbf16, #tpu.memory_space<vmem>>, %arg7: memref<16x1xf32, #tpu.memory_space<vmem>>, %arg8: memref<256x64xbf16, #tpu.memory_space<vmem>>, %arg9: memref<128x64xbf16, #tpu.memory_space<vmem>>, %arg10: memref<32x16xbf16, #tpu.memory_space<vmem>>, %arg11: memref<32x1xf32, #tpu.memory_space<vmem>>, %arg12: memref<32x32xbf16, #tpu.memory_space<vmem>>, %arg13: memref<32x1xf32, #tpu.memory_space<vmem>>, %arg14: memref<64x16xbf16, #tpu.memory_space<vmem>>, %arg15: memref<16x32xbf16, #tpu.memory_space<vmem>>, %arg16: memref<32x16xbf16, #tpu.memory_space<vmem>>, %arg17: memref<64x32xbf16, #tpu.memory_space<vmem>>, %arg18: memref<64x1xf32, #tpu.memory_space<vmem>>, %arg19: memref<64x64xbf16, #tpu.memory_space<vmem>>, %arg20: memref<64x1xf32, #tpu.memory_space<vmem>>, %arg21: memref<16x5xbf16, #tpu.memory_space<vmem>>, %arg22: memref<32x64xbf16, #tpu.memory_space<vmem>>, %arg23: memref<32x1xf32, #tpu.memory_space<vmem>>, %arg24: memref<1x32x5xf32, #tpu.memory_space<vmem>>) attributes {dimension_semantics = [#tpu.dimension_semantics<parallel>], iteration_bounds = array<i64: 2>, scalar_prefetch = 0 : i64, scratch_operands = 0 : i64, tpu.core_type = #tpu.core_type<tc>, window_params = [{transform_indices = @transform_0, window_bounds = array<i64: 1, 148, 2304>}, {pipeline_mode = #tpu.pipeline_mode<synchronous>, transform_indices = @transform_1, window_bounds = array<i64: 8, 148>}, {pipeline_mode = #tpu.pipeline_mode<synchronous>, transform_indices = @transform_2, window_bounds = array<i64: 8, 1>}, {pipeline_mode = #tpu.pipeline_mode<synchronous>, transform_indices = @transform_3, window_bounds = array<i64: 16, 8>}, {pipeline_mode = #tpu.pipeline_mode<synchronous>, transform_indices = @transform_4, window_bounds = array<i64: 16, 1>}, {pipeline_mode = #tpu.pipeline_mode<synchronous>, transform_indices = @transform_5, window_bounds = array<i64: 16, 16>}, {pipeline_mode = #tpu.pipeline_mode<synchronous>, transform_indices = @transform_6, window_bounds = array<i64: 16, 1>}, {pipeline_mode = #tpu.pipeline_mode<synchronous>, transform_indices = @transform_7, window_bounds = array<i64: 256, 64>}, {pipeline_mode = #tpu.pipeline_mode<synchronous>, transform_indices = @transform_8, window_bounds = array<i64: 128, 64>}, {pipeline_mode = #tpu.pipeline_mode<synchronous>, transform_indices = @transform_9, window_bounds = array<i64: 32, 16>}, {pipeline_mode = #tpu.pipeline_mode<synchronous>, transform_indices = @transform_10, window_bounds = array<i64: 32, 1>}, {pipeline_mode = #tpu.pipeline_mode<synchronous>, transform_indices = @transform_11, window_bounds = array<i64: 32, 32>}, {pipeline_mode = #tpu.pipeline_mode<synchronous>, transform_indices = @transform_12, window_bounds = array<i64: 32, 1>}, {pipeline_mode = #tpu.pipeline_mode<synchronous>, transform_indices = @transform_13, window_bounds = array<i64: 64, 16>}, {pipeline_mode = #tpu.pipeline_mode<synchronous>, transform_indices = @transform_14, window_bounds = array<i64: 16, 32>}, {pipeline_mode = #tpu.pipeline_mode<synchronous>, transform_indices = @transform_15, window_bounds = array<i64: 32, 16>}, {pipeline_mode = #tpu.pipeline_mode<synchronous>, transform_indices = @transform_16, window_bounds = array<i64: 64, 32>}, {pipeline_mode = #tpu.pipeline_mode<synchronous>, transform_indices = @transform_17, window_bounds = array<i64: 64, 1>}, {pipeline_mode = #tpu.pipeline_mode<synchronous>, transform_indices = @transform_18, window_bounds = array<i64: 64, 64>}, {pipeline_mode = #tpu.pipeline_mode<synchronous>, transform_indices = @transform_19, window_bounds = array<i64: 64, 1>}, {pipeline_mode = #tpu.pipeline_mode<synchronous>, transform_indices = @transform_20, window_bounds = array<i64: 16, 5>}, {pipeline_mode = #tpu.pipeline_mode<synchronous>, transform_indices = @transform_21, window_bounds = array<i64: 32, 64>}, {pipeline_mode = #tpu.pipeline_mode<synchronous>, transform_indices = @transform_22, window_bounds = array<i64: 32, 1>}, {transform_indices = @transform_23, window_bounds = array<i64: 1, 32, 5>}]} {
    %c0 = arith.constant 0 : index
    %c0_0 = arith.constant 0 : index
    %c0_1 = arith.constant 0 : index
    %0 = vector.load %arg1[%c0, %c0_0, %c0_1] : memref<1x148x2304xbf16, #tpu.memory_space<vmem>>, vector<1x148x2304xbf16>
    %1 = vector.shape_cast %0 : vector<1x148x2304xbf16> to vector<148x2304xbf16>
    %c0_2 = arith.constant 0 : index
    %c0_3 = arith.constant 0 : index
    %2 = vector.load %arg2[%c0_2, %c0_3] : memref<8x148xbf16, #tpu.memory_space<vmem>>, vector<8x148xbf16>
    %cst = arith.constant dense<0.000000e+00> : vector<8x2304xf32>
    %3 = tpu.matmul %2, %1, %cst {dimension_numbers = #tpu.dot_dimension_numbers<[1], [0], [0], [1], [0, 0, 1, 1], [], []>} : vector<8x148xbf16>, vector<148x2304xbf16>, vector<8x2304xf32> -> vector<8x2304xf32>
    %c0_4 = arith.constant 0 : index
    %c0_5 = arith.constant 0 : index
    %4 = vector.load %arg3[%c0_4, %c0_5] : memref<8x1xf32, #tpu.memory_space<vmem>>, vector<8x1xf32>
    %5 = vector.broadcast %4 : vector<8x1xf32> to vector<8x2304xf32>
    %6 = arith.addf %3, %5 : vector<8x2304xf32>
    %cst_6 = arith.constant 0.000000e+00 : f32
    %7 = vector.broadcast %cst_6 : f32 to vector<8x2304xf32>
    %8 = arith.maximumf %6, %7 : vector<8x2304xf32>
    %9 = arith.truncf %8 : vector<8x2304xf32> to vector<8x2304xbf16>
    %10 = vector.extract_strided_slice %9 {offsets = [0, 0], sizes = [8, 256], strides = [1, 1]} : vector<8x2304xbf16> to vector<8x256xbf16>
    %11 = vector.extract_strided_slice %9 {offsets = [0, 256], sizes = [8, 256], strides = [1, 1]} : vector<8x2304xbf16> to vector<8x256xbf16>
    %12 = arith.maximumf %10, %11 : vector<8x256xbf16>
    %13 = vector.extract_strided_slice %9 {offsets = [0, 512], sizes = [8, 256], strides = [1, 1]} : vector<8x2304xbf16> to vector<8x256xbf16>
    %14 = arith.maximumf %12, %13 : vector<8x256xbf16>
    %15 = vector.extract_strided_slice %9 {offsets = [0, 768], sizes = [8, 256], strides = [1, 1]} : vector<8x2304xbf16> to vector<8x256xbf16>
    %16 = arith.maximumf %14, %15 : vector<8x256xbf16>
    %17 = vector.extract_strided_slice %9 {offsets = [0, 1024], sizes = [8, 256], strides = [1, 1]} : vector<8x2304xbf16> to vector<8x256xbf16>
    %18 = arith.maximumf %16, %17 : vector<8x256xbf16>
    %19 = vector.extract_strided_slice %9 {offsets = [0, 1280], sizes = [8, 256], strides = [1, 1]} : vector<8x2304xbf16> to vector<8x256xbf16>
    %20 = arith.maximumf %18, %19 : vector<8x256xbf16>
    %21 = vector.extract_strided_slice %9 {offsets = [0, 1536], sizes = [8, 256], strides = [1, 1]} : vector<8x2304xbf16> to vector<8x256xbf16>
    %22 = arith.maximumf %20, %21 : vector<8x256xbf16>
    %23 = vector.extract_strided_slice %9 {offsets = [0, 1792], sizes = [8, 256], strides = [1, 1]} : vector<8x2304xbf16> to vector<8x256xbf16>
    %24 = arith.maximumf %22, %23 : vector<8x256xbf16>
    %25 = vector.extract_strided_slice %9 {offsets = [0, 2048], sizes = [8, 256], strides = [1, 1]} : vector<8x2304xbf16> to vector<8x256xbf16>
    %26 = arith.maximumf %24, %25 : vector<8x256xbf16>
    %c0_7 = arith.constant 0 : index
    %c0_8 = arith.constant 0 : index
    %27 = vector.load %arg4[%c0_7, %c0_8] : memref<16x8xbf16, #tpu.memory_space<vmem>>, vector<16x8xbf16>
    %cst_9 = arith.constant dense<0.000000e+00> : vector<16x256xf32>
    %28 = tpu.matmul %27, %26, %cst_9 {dimension_numbers = #tpu.dot_dimension_numbers<[1], [0], [0], [1], [0, 0, 1, 1], [], []>} : vector<16x8xbf16>, vector<8x256xbf16>, vector<16x256xf32> -> vector<16x256xf32>
    %c0_10 = arith.constant 0 : index
    %c0_11 = arith.constant 0 : index
    %29 = vector.load %arg5[%c0_10, %c0_11] : memref<16x1xf32, #tpu.memory_space<vmem>>, vector<16x1xf32>
    %30 = vector.broadcast %29 : vector<16x1xf32> to vector<16x256xf32>
    %31 = arith.addf %28, %30 : vector<16x256xf32>
    %cst_12 = arith.constant 0.000000e+00 : f32
    %32 = vector.broadcast %cst_12 : f32 to vector<16x256xf32>
    %33 = arith.maximumf %31, %32 : vector<16x256xf32>
    %34 = arith.truncf %33 : vector<16x256xf32> to vector<16x256xbf16>
    %c0_13 = arith.constant 0 : index
    %c0_14 = arith.constant 0 : index
    %35 = vector.load %arg6[%c0_13, %c0_14] : memref<16x16xbf16, #tpu.memory_space<vmem>>, vector<16x16xbf16>
    %cst_15 = arith.constant dense<0.000000e+00> : vector<16x256xf32>
    %36 = tpu.matmul %35, %34, %cst_15 {dimension_numbers = #tpu.dot_dimension_numbers<[1], [0], [0], [1], [0, 0, 1, 1], [], []>} : vector<16x16xbf16>, vector<16x256xbf16>, vector<16x256xf32> -> vector<16x256xf32>
    %c0_16 = arith.constant 0 : index
    %c0_17 = arith.constant 0 : index
    %37 = vector.load %arg7[%c0_16, %c0_17] : memref<16x1xf32, #tpu.memory_space<vmem>>, vector<16x1xf32>
    %38 = vector.broadcast %37 : vector<16x1xf32> to vector<16x256xf32>
    %39 = arith.addf %36, %38 : vector<16x256xf32>
    %cst_18 = arith.constant 0.000000e+00 : f32
    %40 = vector.broadcast %cst_18 : f32 to vector<16x256xf32>
    %41 = arith.maximumf %39, %40 : vector<16x256xf32>
    %42 = arith.truncf %41 : vector<16x256xf32> to vector<16x256xbf16>
    %c0_19 = arith.constant 0 : index
    %c0_20 = arith.constant 0 : index
    %43 = vector.load %arg8[%c0_19, %c0_20] : memref<256x64xbf16, #tpu.memory_space<vmem>>, vector<256x64xbf16>
    %cst_21 = arith.constant dense<0.000000e+00> : vector<16x64xf32>
    %44 = tpu.matmul %42, %43, %cst_21 {dimension_numbers = #tpu.dot_dimension_numbers<[1], [0], [0], [1], [0, 0, 1, 1], [], []>} : vector<16x256xbf16>, vector<256x64xbf16>, vector<16x64xf32> -> vector<16x64xf32>
    %45 = arith.truncf %44 : vector<16x64xf32> to vector<16x64xbf16>
    %46 = arith.extf %45 : vector<16x64xbf16> to vector<16x64xf32>
    %cst_22 = arith.constant dense<0xFF800000> : vector<64xf32>
    %47 = vector.multi_reduction <maximumf>, %46, %cst_22 [0] : vector<16x64xf32> to vector<64xf32>
    %48 = vector.shape_cast %47 : vector<64xf32> to vector<1x64xf32>
    %49 = arith.truncf %48 : vector<1x64xf32> to vector<1x64xbf16>
    %cst_23 = arith.constant dense<0.000000e+00> : vector<64xf32>
    %50 = vector.multi_reduction <add>, %46, %cst_23 [0] : vector<16x64xf32> to vector<64xf32>
    %51 = vector.shape_cast %50 : vector<64xf32> to vector<1x64xf32>
    %cst_24 = arith.constant 1.600000e+01 : f32
    %52 = vector.broadcast %cst_24 : f32 to vector<1x64xf32>
    %53 = arith.divf %51, %52 : vector<1x64xf32>
    %54 = arith.truncf %53 : vector<1x64xf32> to vector<1x64xbf16>
    %c0_25 = arith.constant 0 : index
    %c0_26 = arith.constant 0 : index
    %55 = vector.load %arg9[%c0_25, %c0_26] : memref<128x64xbf16, #tpu.memory_space<vmem>>, vector<64x64xbf16>
    %cst_27 = arith.constant dense<0.000000e+00> : vector<1x64xf32>
    %56 = tpu.matmul %49, %55, %cst_27 {dimension_numbers = #tpu.dot_dimension_numbers<[1], [0], [0], [1], [0, 0, 1, 1], [], []>} : vector<1x64xbf16>, vector<64x64xbf16>, vector<1x64xf32> -> vector<1x64xf32>
    %c64 = arith.constant 64 : index
    %c0_28 = arith.constant 0 : index
    %57 = vector.load %arg9[%c64, %c0_28] : memref<128x64xbf16, #tpu.memory_space<vmem>>, vector<64x64xbf16>
    %cst_29 = arith.constant dense<0.000000e+00> : vector<1x64xf32>
    %58 = tpu.matmul %54, %57, %cst_29 {dimension_numbers = #tpu.dot_dimension_numbers<[1], [0], [0], [1], [0, 0, 1, 1], [], []>} : vector<1x64xbf16>, vector<64x64xbf16>, vector<1x64xf32> -> vector<1x64xf32>
    %59 = arith.addf %56, %58 : vector<1x64xf32>
    %60 = arith.negf %59 : vector<1x64xf32>
    %61 = math.exp %60 : vector<1x64xf32>
    %cst_30 = arith.constant 1.000000e+00 : f32
    %62 = vector.broadcast %cst_30 : f32 to vector<1x64xf32>
    %63 = arith.addf %62, %61 : vector<1x64xf32>
    %64 = arith.divf %62, %63 : vector<1x64xf32>
    %65 = arith.extf %45 : vector<16x64xbf16> to vector<16x64xf32>
    %66 = vector.broadcast %64 : vector<1x64xf32> to vector<16x64xf32>
    %67 = arith.mulf %65, %66 : vector<16x64xf32>
    %68 = arith.truncf %67 : vector<16x64xf32> to vector<16x64xbf16>
    %c0_31 = arith.constant 0 : index
    %c0_32 = arith.constant 0 : index
    %69 = vector.load %arg10[%c0_31, %c0_32] : memref<32x16xbf16, #tpu.memory_space<vmem>>, vector<32x16xbf16>
    %cst_33 = arith.constant dense<0.000000e+00> : vector<32x64xf32>
    %70 = tpu.matmul %69, %68, %cst_33 {dimension_numbers = #tpu.dot_dimension_numbers<[1], [0], [0], [1], [0, 0, 1, 1], [], []>} : vector<32x16xbf16>, vector<16x64xbf16>, vector<32x64xf32> -> vector<32x64xf32>
    %c0_34 = arith.constant 0 : index
    %c0_35 = arith.constant 0 : index
    %71 = vector.load %arg11[%c0_34, %c0_35] : memref<32x1xf32, #tpu.memory_space<vmem>>, vector<32x1xf32>
    %72 = vector.broadcast %71 : vector<32x1xf32> to vector<32x64xf32>
    %73 = arith.addf %70, %72 : vector<32x64xf32>
    %cst_36 = arith.constant 0.000000e+00 : f32
    %74 = vector.broadcast %cst_36 : f32 to vector<32x64xf32>
    %75 = arith.maximumf %73, %74 : vector<32x64xf32>
    %76 = arith.truncf %75 : vector<32x64xf32> to vector<32x64xbf16>
    %c0_37 = arith.constant 0 : index
    %c0_38 = arith.constant 0 : index
    %77 = vector.load %arg12[%c0_37, %c0_38] : memref<32x32xbf16, #tpu.memory_space<vmem>>, vector<32x32xbf16>
    %cst_39 = arith.constant dense<0.000000e+00> : vector<32x64xf32>
    %78 = tpu.matmul %77, %76, %cst_39 {dimension_numbers = #tpu.dot_dimension_numbers<[1], [0], [0], [1], [0, 0, 1, 1], [], []>} : vector<32x32xbf16>, vector<32x64xbf16>, vector<32x64xf32> -> vector<32x64xf32>
    %c0_40 = arith.constant 0 : index
    %c0_41 = arith.constant 0 : index
    %79 = vector.load %arg13[%c0_40, %c0_41] : memref<32x1xf32, #tpu.memory_space<vmem>>, vector<32x1xf32>
    %80 = vector.broadcast %79 : vector<32x1xf32> to vector<32x64xf32>
    %81 = arith.addf %78, %80 : vector<32x64xf32>
    %cst_42 = arith.constant 0.000000e+00 : f32
    %82 = vector.broadcast %cst_42 : f32 to vector<32x64xf32>
    %83 = arith.maximumf %81, %82 : vector<32x64xf32>
    %84 = arith.truncf %83 : vector<32x64xf32> to vector<32x64xbf16>
    %c0_43 = arith.constant 0 : index
    %c0_44 = arith.constant 0 : index
    %85 = vector.load %arg14[%c0_43, %c0_44] : memref<64x16xbf16, #tpu.memory_space<vmem>>, vector<64x16xbf16>
    %cst_45 = arith.constant dense<0.000000e+00> : vector<32x16xf32>
    %86 = tpu.matmul %84, %85, %cst_45 {dimension_numbers = #tpu.dot_dimension_numbers<[1], [0], [0], [1], [0, 0, 1, 1], [], []>} : vector<32x64xbf16>, vector<64x16xbf16>, vector<32x16xf32> -> vector<32x16xf32>
    %87 = arith.truncf %86 : vector<32x16xf32> to vector<32x16xbf16>
    %88 = arith.extf %87 : vector<32x16xbf16> to vector<32x16xf32>
    %cst_46 = arith.constant dense<0xFF800000> : vector<32xf32>
    %89 = vector.multi_reduction <maximumf>, %88, %cst_46 [1] : vector<32x16xf32> to vector<32xf32>
    %90 = vector.shape_cast %89 : vector<32xf32> to vector<32x1xf32>
    %91 = arith.truncf %90 : vector<32x1xf32> to vector<32x1xbf16>
    %cst_47 = arith.constant dense<0.000000e+00> : vector<32xf32>
    %92 = vector.multi_reduction <add>, %88, %cst_47 [1] : vector<32x16xf32> to vector<32xf32>
    %93 = vector.shape_cast %92 : vector<32xf32> to vector<32x1xf32>
    %cst_48 = arith.constant 1.600000e+01 : f32
    %94 = vector.broadcast %cst_48 : f32 to vector<32x1xf32>
    %95 = arith.divf %93, %94 : vector<32x1xf32>
    %96 = arith.truncf %95 : vector<32x1xf32> to vector<32x1xbf16>
    %c0_49 = arith.constant 0 : index
    %c0_50 = arith.constant 0 : index
    %97 = vector.load %arg16[%c0_49, %c0_50] : memref<32x16xbf16, #tpu.memory_space<vmem>>, vector<32x16xbf16>
    %c0_51 = arith.constant 0 : index
    %c0_52 = arith.constant 0 : index
    %98 = vector.load %arg15[%c0_51, %c0_52] : memref<16x32xbf16, #tpu.memory_space<vmem>>, vector<16x32xbf16>
    %cst_53 = arith.constant dense<0.000000e+00> : vector<16x1xf32>
    %99 = tpu.matmul %98, %91, %cst_53 {dimension_numbers = #tpu.dot_dimension_numbers<[1], [0], [0], [1], [0, 0, 1, 1], [], []>} : vector<16x32xbf16>, vector<32x1xbf16>, vector<16x1xf32> -> vector<16x1xf32>
    %cst_54 = arith.constant 0.000000e+00 : f32
    %100 = vector.broadcast %cst_54 : f32 to vector<16x1xf32>
    %101 = arith.maximumf %99, %100 : vector<16x1xf32>
    %102 = arith.truncf %101 : vector<16x1xf32> to vector<16x1xbf16>
    %cst_55 = arith.constant dense<0.000000e+00> : vector<32x1xf32>
    %103 = tpu.matmul %97, %102, %cst_55 {dimension_numbers = #tpu.dot_dimension_numbers<[1], [0], [0], [1], [0, 0, 1, 1], [], []>} : vector<32x16xbf16>, vector<16x1xbf16>, vector<32x1xf32> -> vector<32x1xf32>
    %c0_56 = arith.constant 0 : index
    %c0_57 = arith.constant 0 : index
    %104 = vector.load %arg16[%c0_56, %c0_57] : memref<32x16xbf16, #tpu.memory_space<vmem>>, vector<32x16xbf16>
    %c0_58 = arith.constant 0 : index
    %c0_59 = arith.constant 0 : index
    %105 = vector.load %arg15[%c0_58, %c0_59] : memref<16x32xbf16, #tpu.memory_space<vmem>>, vector<16x32xbf16>
    %cst_60 = arith.constant dense<0.000000e+00> : vector<16x1xf32>
    %106 = tpu.matmul %105, %96, %cst_60 {dimension_numbers = #tpu.dot_dimension_numbers<[1], [0], [0], [1], [0, 0, 1, 1], [], []>} : vector<16x32xbf16>, vector<32x1xbf16>, vector<16x1xf32> -> vector<16x1xf32>
    %cst_61 = arith.constant 0.000000e+00 : f32
    %107 = vector.broadcast %cst_61 : f32 to vector<16x1xf32>
    %108 = arith.maximumf %106, %107 : vector<16x1xf32>
    %109 = arith.truncf %108 : vector<16x1xf32> to vector<16x1xbf16>
    %cst_62 = arith.constant dense<0.000000e+00> : vector<32x1xf32>
    %110 = tpu.matmul %104, %109, %cst_62 {dimension_numbers = #tpu.dot_dimension_numbers<[1], [0], [0], [1], [0, 0, 1, 1], [], []>} : vector<32x16xbf16>, vector<16x1xbf16>, vector<32x1xf32> -> vector<32x1xf32>
    %111 = arith.addf %103, %110 : vector<32x1xf32>
    %112 = arith.negf %111 : vector<32x1xf32>
    %113 = math.exp %112 : vector<32x1xf32>
    %cst_63 = arith.constant 1.000000e+00 : f32
    %114 = vector.broadcast %cst_63 : f32 to vector<32x1xf32>
    %115 = arith.addf %114, %113 : vector<32x1xf32>
    %116 = arith.divf %114, %115 : vector<32x1xf32>
    %117 = arith.extf %87 : vector<32x16xbf16> to vector<32x16xf32>
    %118 = vector.broadcast %116 : vector<32x1xf32> to vector<32x16xf32>
    %119 = arith.mulf %117, %118 : vector<32x16xf32>
    %120 = arith.truncf %119 : vector<32x16xf32> to vector<32x16xbf16>
    %c0_64 = arith.constant 0 : index
    %c0_65 = arith.constant 0 : index
    %121 = vector.load %arg17[%c0_64, %c0_65] : memref<64x32xbf16, #tpu.memory_space<vmem>>, vector<64x32xbf16>
    %cst_66 = arith.constant dense<0.000000e+00> : vector<64x16xf32>
    %122 = tpu.matmul %121, %120, %cst_66 {dimension_numbers = #tpu.dot_dimension_numbers<[1], [0], [0], [1], [0, 0, 1, 1], [], []>} : vector<64x32xbf16>, vector<32x16xbf16>, vector<64x16xf32> -> vector<64x16xf32>
    %c0_67 = arith.constant 0 : index
    %c0_68 = arith.constant 0 : index
    %123 = vector.load %arg18[%c0_67, %c0_68] : memref<64x1xf32, #tpu.memory_space<vmem>>, vector<64x1xf32>
    %124 = vector.broadcast %123 : vector<64x1xf32> to vector<64x16xf32>
    %125 = arith.addf %122, %124 : vector<64x16xf32>
    %cst_69 = arith.constant 0.000000e+00 : f32
    %126 = vector.broadcast %cst_69 : f32 to vector<64x16xf32>
    %127 = arith.maximumf %125, %126 : vector<64x16xf32>
    %128 = arith.truncf %127 : vector<64x16xf32> to vector<64x16xbf16>
    %c0_70 = arith.constant 0 : index
    %c0_71 = arith.constant 0 : index
    %129 = vector.load %arg19[%c0_70, %c0_71] : memref<64x64xbf16, #tpu.memory_space<vmem>>, vector<64x64xbf16>
    %cst_72 = arith.constant dense<0.000000e+00> : vector<64x16xf32>
    %130 = tpu.matmul %129, %128, %cst_72 {dimension_numbers = #tpu.dot_dimension_numbers<[1], [0], [0], [1], [0, 0, 1, 1], [], []>} : vector<64x64xbf16>, vector<64x16xbf16>, vector<64x16xf32> -> vector<64x16xf32>
    %c0_73 = arith.constant 0 : index
    %c0_74 = arith.constant 0 : index
    %131 = vector.load %arg20[%c0_73, %c0_74] : memref<64x1xf32, #tpu.memory_space<vmem>>, vector<64x1xf32>
    %132 = vector.broadcast %131 : vector<64x1xf32> to vector<64x16xf32>
    %133 = arith.addf %130, %132 : vector<64x16xf32>
    %cst_75 = arith.constant 0.000000e+00 : f32
    %134 = vector.broadcast %cst_75 : f32 to vector<64x16xf32>
    %135 = arith.maximumf %133, %134 : vector<64x16xf32>
    %136 = arith.truncf %135 : vector<64x16xf32> to vector<64x16xbf16>
    %c0_76 = arith.constant 0 : index
    %c0_77 = arith.constant 0 : index
    %137 = vector.load %arg21[%c0_76, %c0_77] : memref<16x5xbf16, #tpu.memory_space<vmem>>, vector<16x5xbf16>
    %cst_78 = arith.constant dense<0.000000e+00> : vector<64x5xf32>
    %138 = tpu.matmul %136, %137, %cst_78 {dimension_numbers = #tpu.dot_dimension_numbers<[1], [0], [0], [1], [0, 0, 1, 1], [], []>} : vector<64x16xbf16>, vector<16x5xbf16>, vector<64x5xf32> -> vector<64x5xf32>
    %139 = arith.truncf %138 : vector<64x5xf32> to vector<64x5xbf16>
    %c0_79 = arith.constant 0 : index
    %c0_80 = arith.constant 0 : index
    %140 = vector.load %arg22[%c0_79, %c0_80] : memref<32x64xbf16, #tpu.memory_space<vmem>>, vector<32x64xbf16>
    %cst_81 = arith.constant dense<0.000000e+00> : vector<32x5xf32>
    %141 = tpu.matmul %140, %139, %cst_81 {dimension_numbers = #tpu.dot_dimension_numbers<[1], [0], [0], [1], [0, 0, 1, 1], [], []>} : vector<32x64xbf16>, vector<64x5xbf16>, vector<32x5xf32> -> vector<32x5xf32>
    %c0_82 = arith.constant 0 : index
    %c0_83 = arith.constant 0 : index
    %142 = vector.load %arg23[%c0_82, %c0_83] : memref<32x1xf32, #tpu.memory_space<vmem>>, vector<32x1xf32>
    %143 = vector.broadcast %142 : vector<32x1xf32> to vector<32x5xf32>
    %144 = arith.addf %141, %143 : vector<32x5xf32>
    %cst_84 = arith.constant 3.000000e+00 : f32
    %145 = vector.broadcast %cst_84 : f32 to vector<32x5xf32>
    %146 = arith.addf %144, %145 : vector<32x5xf32>
    %cst_85 = arith.constant 0.000000e+00 : f32
    %cst_86 = arith.constant 6.000000e+00 : f32
    %147 = vector.broadcast %cst_85 : f32 to vector<32x5xf32>
    %148 = arith.maximumf %147, %146 : vector<32x5xf32>
    %149 = vector.broadcast %cst_86 : f32 to vector<32x5xf32>
    %150 = arith.minimumf %149, %148 : vector<32x5xf32>
    %151 = arith.mulf %144, %150 : vector<32x5xf32>
    %cst_87 = arith.constant 0.166666672 : f32
    %152 = vector.broadcast %cst_87 : f32 to vector<32x5xf32>
    %153 = arith.mulf %151, %152 : vector<32x5xf32>
    %154 = arith.mulf %153, %153 : vector<32x5xf32>
    %cst_88 = arith.constant dense<0.000000e+00> : vector<5xf32>
    %155 = vector.multi_reduction <add>, %154, %cst_88 [0] : vector<32x5xf32> to vector<5xf32>
    %156 = vector.shape_cast %155 : vector<5xf32> to vector<1x5xf32>
    %157 = math.sqrt %156 : vector<1x5xf32>
    %cst_89 = arith.constant 9.99999996E-13 : f32
    %158 = vector.broadcast %cst_89 : f32 to vector<1x5xf32>
    %159 = arith.maximumf %157, %158 : vector<1x5xf32>
    %160 = vector.broadcast %159 : vector<1x5xf32> to vector<32x5xf32>
    %161 = arith.divf %153, %160 : vector<32x5xf32>
    %c0_90 = arith.constant 0 : index
    %c0_91 = arith.constant 0 : index
    %c0_92 = arith.constant 0 : index
    %162 = vector.load %arg24[%c0_90, %c0_91, %c0_92] : memref<1x32x5xf32, #tpu.memory_space<vmem>>, vector<1x32x5xf32>
    %163 = vector.shape_cast %162 : vector<1x32x5xf32> to vector<32x5xf32>
    %164 = vector.shape_cast %161 : vector<32x5xf32> to vector<1x32x5xf32>
    tpu.vector_store %arg24[%c0_90, %c0_91, %c0_92], %164 {strides = array<i32>} : memref<1x32x5xf32, #tpu.memory_space<vmem>>, vector<1x32x5xf32>,
    return
  }
  func.func @transform_0(%arg0: i32) -> (i32, i32, i32) {
    %c0_i32 = arith.constant 0 : i32
    %c0_i32_0 = arith.constant 0 : i32
    %c0_i32_1 = arith.constant 0 : i32
    return %arg0, %c0_i32, %c0_i32_0 : i32, i32, i32
  }
  func.func @transform_1(%arg0: i32) -> (i32, i32) {
    %c0_i32 = arith.constant 0 : i32
    %c0_i32_0 = arith.constant 0 : i32
    %c0_i32_1 = arith.constant 0 : i32
    return %c0_i32, %c0_i32_0 : i32, i32
  }
  func.func @transform_2(%arg0: i32) -> (i32, i32) {
    %c0_i32 = arith.constant 0 : i32
    %c0_i32_0 = arith.constant 0 : i32
    %c0_i32_1 = arith.constant 0 : i32
    return %c0_i32, %c0_i32_0 : i32, i32
  }
  func.func @transform_3(%arg0: i32) -> (i32, i32) {
    %c0_i32 = arith.constant 0 : i32
    %c0_i32_0 = arith.constant 0 : i32
    %c0_i32_1 = arith.constant 0 : i32
    return %c0_i32, %c0_i32_0 : i32, i32
  }
  func.func @transform_4(%arg0: i32) -> (i32, i32) {
    %c0_i32 = arith.constant 0 : i32
    %c0_i32_0 = arith.constant 0 : i32
    %c0_i32_1 = arith.constant 0 : i32
    return %c0_i32, %c0_i32_0 : i32, i32
  }
  func.func @transform_5(%arg0: i32) -> (i32, i32) {
    %c0_i32 = arith.constant 0 : i32
    %c0_i32_0 = arith.constant 0 : i32
    %c0_i32_1 = arith.constant 0 : i32
    return %c0_i32, %c0_i32_0 : i32, i32
  }
  func.func @transform_6(%arg0: i32) -> (i32, i32) {
    %c0_i32 = arith.constant 0 : i32
    %c0_i32_0 = arith.constant 0 : i32
    %c0_i32_1 = arith.constant 0 : i32
    return %c0_i32, %c0_i32_0 : i32, i32
  }
  func.func @transform_7(%arg0: i32) -> (i32, i32) {
    %c0_i32 = arith.constant 0 : i32
    %c0_i32_0 = arith.constant 0 : i32
    %c0_i32_1 = arith.constant 0 : i32
    return %c0_i32, %c0_i32_0 : i32, i32
  }
  func.func @transform_8(%arg0: i32) -> (i32, i32) {
    %c0_i32 = arith.constant 0 : i32
    %c0_i32_0 = arith.constant 0 : i32
    %c0_i32_1 = arith.constant 0 : i32
    return %c0_i32, %c0_i32_0 : i32, i32
  }
  func.func @transform_9(%arg0: i32) -> (i32, i32) {
    %c0_i32 = arith.constant 0 : i32
    %c0_i32_0 = arith.constant 0 : i32
    %c0_i32_1 = arith.constant 0 : i32
    return %c0_i32, %c0_i32_0 : i32, i32
  }
  func.func @transform_10(%arg0: i32) -> (i32, i32) {
    %c0_i32 = arith.constant 0 : i32
    %c0_i32_0 = arith.constant 0 : i32
    %c0_i32_1 = arith.constant 0 : i32
    return %c0_i32, %c0_i32_0 : i32, i32
  }
  func.func @transform_11(%arg0: i32) -> (i32, i32) {
    %c0_i32 = arith.constant 0 : i32
    %c0_i32_0 = arith.constant 0 : i32
    %c0_i32_1 = arith.constant 0 : i32
    return %c0_i32, %c0_i32_0 : i32, i32
  }
  func.func @transform_12(%arg0: i32) -> (i32, i32) {
    %c0_i32 = arith.constant 0 : i32
    %c0_i32_0 = arith.constant 0 : i32
    %c0_i32_1 = arith.constant 0 : i32
    return %c0_i32, %c0_i32_0 : i32, i32
  }
  func.func @transform_13(%arg0: i32) -> (i32, i32) {
    %c0_i32 = arith.constant 0 : i32
    %c0_i32_0 = arith.constant 0 : i32
    %c0_i32_1 = arith.constant 0 : i32
    return %c0_i32, %c0_i32_0 : i32, i32
  }
  func.func @transform_14(%arg0: i32) -> (i32, i32) {
    %c0_i32 = arith.constant 0 : i32
    %c0_i32_0 = arith.constant 0 : i32
    %c0_i32_1 = arith.constant 0 : i32
    return %c0_i32, %c0_i32_0 : i32, i32
  }
  func.func @transform_15(%arg0: i32) -> (i32, i32) {
    %c0_i32 = arith.constant 0 : i32
    %c0_i32_0 = arith.constant 0 : i32
    %c0_i32_1 = arith.constant 0 : i32
    return %c0_i32, %c0_i32_0 : i32, i32
  }
  func.func @transform_16(%arg0: i32) -> (i32, i32) {
    %c0_i32 = arith.constant 0 : i32
    %c0_i32_0 = arith.constant 0 : i32
    %c0_i32_1 = arith.constant 0 : i32
    return %c0_i32, %c0_i32_0 : i32, i32
  }
  func.func @transform_17(%arg0: i32) -> (i32, i32) {
    %c0_i32 = arith.constant 0 : i32
    %c0_i32_0 = arith.constant 0 : i32
    %c0_i32_1 = arith.constant 0 : i32
    return %c0_i32, %c0_i32_0 : i32, i32
  }
  func.func @transform_18(%arg0: i32) -> (i32, i32) {
    %c0_i32 = arith.constant 0 : i32
    %c0_i32_0 = arith.constant 0 : i32
    %c0_i32_1 = arith.constant 0 : i32
    return %c0_i32, %c0_i32_0 : i32, i32
  }
  func.func @transform_19(%arg0: i32) -> (i32, i32) {
    %c0_i32 = arith.constant 0 : i32
    %c0_i32_0 = arith.constant 0 : i32
    %c0_i32_1 = arith.constant 0 : i32
    return %c0_i32, %c0_i32_0 : i32, i32
  }
  func.func @transform_20(%arg0: i32) -> (i32, i32) {
    %c0_i32 = arith.constant 0 : i32
    %c0_i32_0 = arith.constant 0 : i32
    %c0_i32_1 = arith.constant 0 : i32
    return %c0_i32, %c0_i32_0 : i32, i32
  }
  func.func @transform_21(%arg0: i32) -> (i32, i32) {
    %c0_i32 = arith.constant 0 : i32
    %c0_i32_0 = arith.constant 0 : i32
    %c0_i32_1 = arith.constant 0 : i32
    return %c0_i32, %c0_i32_0 : i32, i32
  }
  func.func @transform_22(%arg0: i32) -> (i32, i32) {
    %c0_i32 = arith.constant 0 : i32
    %c0_i32_0 = arith.constant 0 : i32
    %c0_i32_1 = arith.constant 0 : i32
    return %c0_i32, %c0_i32_0 : i32, i32
  }
  func.func @transform_23(%arg0: i32) -> (i32, i32, i32) {
    %c0_i32 = arith.constant 0 : i32
    %c0_i32_0 = arith.constant 0 : i32
    %c0_i32_1 = arith.constant 0 : i32
    return %arg0, %c0_i32, %c0_i32_0 : i32, i32, i32
  }
}

</mosaic_0001>

<bundles_post_ra>
// kernel: osnet_forward.1
= control target key start
LH: loop header
LB: loop body
LE: loop exit
PB: predicated region body
PF: predicated region fallthrough
CT: control target
= control target key end

     0   :  { %s5545_s0 = inlined_call_operand.vmem [shape: bf16[2,148,2304], index: 0, kind: input, shape index: {}]   ;;  %s5546_s1 = inlined_call_operand.vmem [shape: bf16[8,148], index: 1, kind: input, shape index: {}]   ;;  %s5547_s2 = inlined_call_operand.vmem [shape: f32[8,1], index: 2, kind: input, shape index: {}]   ;;  %s5548_s3 = inlined_call_operand.vmem [shape: bf16[16,8], index: 3, kind: input, shape index: {}]   ;;  %s5549_s4 = inlined_call_operand.vmem [shape: f32[16,1], index: 4, kind: input, shape index: {}]   ;;  %s5550_s5 = inlined_call_operand.vmem [shape: bf16[16,16], index: 5, kind: input, shape index: {}]   ;;  %s5551_s6 = inlined_call_operand.vmem [shape: f32[16,1], index: 6, kind: input, shape index: {}]   ;;  %s5552_s7 = inlined_call_operand.vmem [shape: bf16[256,64], index: 7, kind: input, shape index: {}]   ;;  %s5553_s8 = inlined_call_operand.vmem [shape: bf16[128,64], index: 8, kind: input, shape index: {}]   ;;  %s5554_s9 = inlined_call_operand.vmem [shape: bf16[32,16], index: 9, kind: input, shape index: {}]   ;;  %s5555_s10 = inlined_call_operand.vmem [shape: f32[32,1], index: 10, kind: input, shape index: {}]   ;;  %s5556_s11 = inlined_call_operand.vmem [shape: bf16[32,32], index: 11, kind: input, shape index: {}]   ;;  %s5557_s12 = inlined_call_operand.vmem [shape: f32[32,1], index: 12, kind: input, shape index: {}]   ;;  %s5558_s13 = inlined_call_operand.vmem [shape: bf16[64,16], index: 13, kind: input, shape index: {}]   ;;  %s5559_s14 = inlined_call_operand.vmem [shape: bf16[16,32], index: 14, kind: input, shape index: {}]   ;;  %s5560_s15 = inlined_call_operand.vmem [shape: bf16[32,16], index: 15, kind: input, shape index: {}]   ;;  %s5561_s16 = inlined_call_operand.vmem [shape: bf16[64,32], index: 16, kind: input, shape index: {}]   ;;  %s5562_s17 = inlined_call_operand.vmem [shape: f32[64,1], index: 17, kind: input, shape index: {}]   ;;  %s5563_s18 = inlined_call_operand.vmem [shape: bf16[64,64], index: 18, kind: input, shape index: {}]   ;;  %s5564_s19 = inlined_call_operand.vmem [shape: f32[64,1], index: 19, kind: input, shape index: {}]   ;;  %s5565_s20 = inlined_call_operand.vmem [shape: bf16[16,5], index: 20, kind: input, shape index: {}]   ;;  %s5566_s21 = inlined_call_operand.vmem [shape: bf16[32,64], index: 21, kind: input, shape index: {}]   ;;  %s5567_s22 = inlined_call_operand.vmem [shape: f32[32,1], index: 22, kind: input, shape index: {}]   ;;  %s5568_s23 = inlined_call_operand.vmem [shape: f32[2,32,5], index: 23, kind: output, shape index: {}]  }
   0x1   :  { %5572 = sst [smem:[#allocation2_spill]] %s5545_s0 }
   0x2   :  { %5573 = sst [smem:[#allocation3_spill]] %s5546_s1 }
   0x3   :  { %5574 = sst [smem:[#allocation4_spill]] %s5547_s2 }
   0x4   :  { %5575 = sst [smem:[#allocation5_spill]] %s5548_s3 }
   0x5   :  { %5576 = sst [smem:[#allocation6_spill]] %s5549_s4  ;;  %s4937_s4 = smov 0  }
   0x6   :  { %5577 = sst [smem:[#allocation7_spill]] %s5550_s5 }
   0x7   :  { %5578 = sst [smem:[#allocation8_spill]] %s5551_s6 }
   0x8   :  { %5579 = sst [smem:[#allocation9_spill]] %s5552_s7 }
   0x9 LB: > { %s3952_s30 = sadd.s32 4294967295, %s4812_s4   ;;  %p3956_p0 = scmp.ge.s32.totalorder %s4812_s4, 1  ;;  %s4812_s4 = sphi %s4937_s4, %s33_s4  }
   0xa   : > { %p637_p1 = scmp.lt.s32.totalorder %s4812_s4, 3 }
   0xc   : > { %p638_p2 = pnand %p3956_p0, %p637_p1 }
   0xd   : > { %p701_p3 = scmp.lt.s32.totalorder (!%p638_p2), %s3952_s30, 1  ;;  %s5580_s5 = sld [smem:[#allocation3_spill]] (!%p638_p2) }
   0xe   : > { %641 = sbr.rel (%p638_p2) target bundleno = 3581 (0xdfd), region = 112  ;;  %s5581_s2 = sld [smem:[#allocation4_spill]] (!%p638_p2) }
   0xf   : > { %s5582_s28 = sld [smem:[#allocation2_spill]] (!%p638_p2) }
  0x10   : > { %s5583_s24 = sld [smem:[#allocation6_spill]] (!%p638_p2) }
  0x11   : > { %s5584_s1 = sld [smem:[#allocation8_spill]] (!%p638_p2) }
  0x12   : > { %s5585_s26 = sld [smem:[#allocation5_spill]] (!%p638_p2) }
  0x13   : > { %v4948_v0 = vld [vmem:[%s5580_s5] sm:$0xff]  ;;  %vm1751_vm0 = vcmask 162816   ;;  %v4814_v3 = vmov 0   ;;  %s5589_s30 = smov (!%p701_p3, %s3952_s30), 1  ;;  %vm1755_vm1 = vcmask 1041408   ;;  %vm2254_vm2 = vcmask 1043456  }
  0x14   : > { %v884_v1 = vld [vmem:[%s5581_s2] sm:$0xff]  ;;  %v4955_v2 = vcombine.high %v4948_v0, %v4948_v0  ;;  %4469 = vset.pattern.permute.xlu0 %v4814_v3  ;;  %4470 = vset.pattern.permute.xlu1 %v4814_v3  ;;  %s4457_s6 = smul.u32 1368, %s5589_s30  ;;  %v5017_v50 = vcombine.low %v4948_v0, %v4948_v0  ;;  %vm2250_vm3 = vcmask 64512   ;;  %s5586_s27 = sld [smem:[#allocation9_spill]]  ;;  %vm2329_vm4 = vcmask 130048  }
  0x15   : > { %887 = vperm.xlu0 %4469, %v884_v1   ;;  %s5587_s3 = sld [smem:[#allocation7_spill]]  ;;  %vm4816_vm5 = vmmov 0   ;;  %vm2554_vm6 = vcmask 523264   ;;  %vm2877_vm7 = vcmask 261120   ;;  %vm3866_vm8 = vcmask 39936   ;;  %s4246_s0 = sshll.u32 %s5589_s30, 5 }
  0x16   : > { %4143 = vmatprep.mubr.msk.bf16.mxu0 %vm1751_vm0, %v4955_v2  ;;  %4145 = vmatprep.mubr.msk.bf16.mxu1 %vm1751_vm0, %v4955_v2  ;;  %s4969_s29 = scalar_lea.vmem %s5582_s28, %s4457_s6  ;;  %s710_s5 = scalar_lea.vmem %s5568_s23, %s4246_s0 }
  0x17   : > { %v4471_v4 = vld [vmem:[%s4969_s29 + $0x3f4] ss:$72 sps:$4 sm:$0xff]   ;;  %v4475_v6 = vld [vmem:[%s4969_s29 + $0x3f0] ss:$72 sps:$4 sm:$0xff]   ;;  %v4477_v8 = vld [vmem:[%s4969_s29 + $0x364] ss:$72 sps:$4 sm:$0xff]  }
  0x18   : > { %v4473_v5 = vld [vmem:[%s4969_s29 + $0x3fc] ss:$72 sps:$4 sm:$0xff]   ;;  %1810 = vmatprep.subr.bf16.mxu0 %v4471_v4  ;;  %v4476_v7 = vld [vmem:[%s4969_s29 + $0x3f8] ss:$72 sps:$4 sm:$0xff]   ;;  %v4479_v9 = vld [vmem:[%s4969_s29 + $0x36c] ss:$72 sps:$4 sm:$0xff]  }
  0x19   : > { %1851 = vmatprep.subr.bf16.mxu1 %v4473_v5  ;;  %1811 = vmatpush1.bf16.msra.mxu0 %v4475_v6  ;;  %v4481_v10 = vld [vmem:[%s4969_s29 + $0x360] ss:$72 sps:$4 sm:$0xff]   ;;  %v4483_v12 = vld [vmem:[%s4969_s29 + $0x2d4] ss:$72 sps:$4 sm:$0xff]   ;;  %v4487_v14 = vld [vmem:[%s4969_s29 + $0x2d0] ss:$72 sps:$4 sm:$0xff]  }
  0x1a   : > { %1852 = vmatpush1.bf16.msra.mxu1 %v4476_v7  ;;  %1812 = vmatprep.subr.bf16.mxu0 %v4477_v8  ;;  %v4482_v11 = vld [vmem:[%s4969_s29 + $0x368] ss:$72 sps:$4 sm:$0xff]   ;;  %v4485_v13 = vld [vmem:[%s4969_s29 + $0x2dc] ss:$72 sps:$4 sm:$0xff]   ;;  %v4488_v15 = vld [vmem:[%s4969_s29 + $0x2d8] ss:$72 sps:$4 sm:$0xff]  }
  0x1b   : > { %1853 = vmatprep.subr.bf16.mxu1 %v4479_v9  ;;  %v4489_v16 = vld [vmem:[%s4969_s29 + $0x244] ss:$72 sps:$4 sm:$0xff]   ;;  %v4493_v18 = vld [vmem:[%s4969_s29 + $0x240] ss:$72 sps:$4 sm:$0xff]   ;;  %v4495_v20 = vld [vmem:[%s4969_s29 + $0x1b4] ss:$72 sps:$4 sm:$0xff]  }
  0x1c   : > { %v4491_v17 = vld [vmem:[%s4969_s29 + $0x24c] ss:$72 sps:$4 sm:$0xff]   ;;  %v4494_v19 = vld [vmem:[%s4969_s29 + $0x248] ss:$72 sps:$4 sm:$0xff]   ;;  %v4497_v21 = vld [vmem:[%s4969_s29 + $0x1bc] ss:$72 sps:$4 sm:$0xff]  }
  0x1d   : > { %1813 = vmatpush1.bf16.msra.mxu0 %v4481_v10  ;;  %v4499_v22 = vld [vmem:[%s4969_s29 + $0x1b0] ss:$72 sps:$4 sm:$0xff]   ;;  %v4501_v24 = vld [vmem:[%s4969_s29 + $0x124] ss:$72 sps:$4 sm:$0xff]   ;;  %v4505_v26 = vld [vmem:[%s4969_s29 + $0x120] ss:$72 sps:$4 sm:$0xff]  }
  0x1e   : > { %1854 = vmatpush1.bf16.msra.mxu1 %v4482_v11  ;;  %1814 = vmatprep.subr.bf16.mxu0 %v4483_v12  ;;  %v4500_v23 = vld [vmem:[%s4969_s29 + $0x1b8] ss:$72 sps:$4 sm:$0xff]   ;;  %v4503_v25 = vld [vmem:[%s4969_s29 + $0x12c] ss:$72 sps:$4 sm:$0xff]   ;;  %v4506_v27 = vld [vmem:[%s4969_s29 + $0x128] ss:$72 sps:$4 sm:$0xff]  }
  0x1f   : > { %1855 = vmatprep.subr.bf16.mxu1 %v4485_v13  ;;  %v4507_v28 = vld [vmem:[%s4969_s29 + $0x94] ss:$72 sps:$4 sm:$0xff]   ;;  %v4511_v30 = vld [vmem:[%s4969_s29 + $0x90] ss:$72 sps:$4 sm:$0xff]   ;;  %v4513_v32 = vld [vmem:[%s4969_s29 + $0x4] ss:$72 sps:$4 sm:$0xff]  }
  0x20   : > { %v4509_v29 = vld [vmem:[%s4969_s29 + $0x9c] ss:$72 sps:$4 sm:$0xff]   ;;  %v4512_v31 = vld [vmem:[%s4969_s29 + $0x98] ss:$72 sps:$4 sm:$0xff]   ;;  %v4515_v33 = vld [vmem:[%s4969_s29 + $0xc] ss:$72 sps:$4 sm:$0xff]  }
  0x21   : > { %1815 = vmatpush1.bf16.msra.mxu0 %v4487_v14  ;;  %v874_v34 = vld [vmem:[%s4969_s29 + $0x510] sm:$0x33]  ;;  %v875_v35 = vld [vmem:[%s4969_s29 + $0x518] sm:$0x33]  ;;  %v4517_v36 = vld [vmem:[%s4969_s29] ss:$72 sps:$4 sm:$0xff]  }
  0x22   : > { %1856 = vmatpush1.bf16.msra.mxu1 %v4488_v15  ;;  %1816 = vmatprep.subr.bf16.mxu0 %v4489_v16  ;;  %v4518_v37 = vld [vmem:[%s4969_s29 + $0x8] ss:$72 sps:$4 sm:$0xff]   ;;  %v4125_v38 = vcombine.high %v874_v34, %v874_v34  ;;  %v4127_v39 = vcombine.high %v875_v35, %v875_v35  ;;  %v4124_v40 = vcombine.low %v874_v34, %v874_v34  ;;  %v4523_v42 = vld [vmem:[%s4969_s29 + $0x484] ss:$72 sps:$4 sm:$0xff]   ;;  %v4539_v53 = vld [vmem:[%s4969_s29 + $0x374] ss:$72 sps:$4 sm:$0xff]  }
  0x23   : > { %1857 = vmatprep.subr.bf16.mxu1 %v4491_v17  ;;  %v4126_v41 = vcombine.low %v875_v35, %v875_v35  ;;  %v4525_v45 = vld [vmem:[%s4969_s29 + $0x48c] ss:$72 sps:$4 sm:$0xff]   ;;  %v4527_v46 = vld [vmem:[%s4969_s29 + $0x480] ss:$72 sps:$4 sm:$0xff]   ;;  %v4542_v54 = vld [vmem:[%s4969_s29 + $0x37c] ss:$72 sps:$4 sm:$0xff]  }
  0x24   : > { %v1757_v43 = vsel %vm1755_vm1, %v4124_v40, 0  ;;  %v4528_v47 = vld [vmem:[%s4969_s29 + $0x488] ss:$72 sps:$4 sm:$0xff]   ;;  %v4533_v48 = vld [vmem:[%s4969_s29 + $0x404] ss:$72 sps:$4 sm:$0xff]  }
  0x25   : > { %1817 = vmatpush1.bf16.msra.mxu0 %v4493_v18  ;;  %v1763_v44 = vsel %vm1755_vm1, %v4126_v41, 0  ;;  %v4536_v49 = vld [vmem:[%s4969_s29 + $0x40c] ss:$72 sps:$4 sm:$0xff]   ;;  %v4531_v51 = vld [vmem:[%s4969_s29 + $0x400] ss:$72 sps:$4 sm:$0xff]  }
  0x26   : > { %1858 = vmatpush1.bf16.msra.mxu1 %v4494_v19  ;;  %1818 = vmatprep.subr.bf16.mxu0 %v4495_v20  ;;  %v4534_v52 = vld [vmem:[%s4969_s29 + $0x408] ss:$72 sps:$4 sm:$0xff]   ;;  %v4540_v56 = vld [vmem:[%s4969_s29 + $0x378] ss:$72 sps:$4 sm:$0xff]   ;;  %v4545_v57 = vld [vmem:[%s4969_s29 + $0x2e4] ss:$72 sps:$4 sm:$0xff]  }
  0x27   : > { %1859 = vmatprep.subr.bf16.mxu1 %v4497_v21  ;;  %v4537_v55 = vld [vmem:[%s4969_s29 + $0x370] ss:$72 sps:$4 sm:$0xff]   ;;  %v4548_v58 = vld [vmem:[%s4969_s29 + $0x2ec] ss:$72 sps:$4 sm:$0xff]   ;;  %v4543_v59 = vld [vmem:[%s4969_s29 + $0x2e0] ss:$72 sps:$4 sm:$0xff]  }
  0x28   : > { %v4546_v60 = vld [vmem:[%s4969_s29 + $0x2e8] ss:$72 sps:$4 sm:$0xff]   ;;  %v4551_v61 = vld [vmem:[%s4969_s29 + $0x254] ss:$72 sps:$4 sm:$0xff]   ;;  %v4552_v0 = vld [vmem:[%s4969_s29 + $0x258] ss:$72 sps:$4 sm:$0xff]  }
  0x29   : > { %1819 = vmatpush1.bf16.msra.mxu0 %v4499_v22  ;;  %v4554_v62 = vld [vmem:[%s4969_s29 + $0x25c] ss:$72 sps:$4 sm:$0xff]   ;;  %v4549_v63 = vld [vmem:[%s4969_s29 + $0x250] ss:$72 sps:$4 sm:$0xff]   ;;  %v4560_v4 = vld [vmem:[%s4969_s29 + $0x1cc] ss:$72 sps:$4 sm:$0xff]  }
  0x2a   : > { %1860 = vmatpush1.bf16.msra.mxu1 %v4500_v23  ;;  %1820 = vmatprep.subr.bf16.mxu0 %v4501_v24  ;;  %v4557_v1 = vld [vmem:[%s4969_s29 + $0x1c4] ss:$72 sps:$4 sm:$0xff]   ;;  %v4555_v5 = vld [vmem:[%s4969_s29 + $0x1c0] ss:$72 sps:$4 sm:$0xff]   ;;  %v4563_v7 = vld [vmem:[%s4969_s29 + $0x134] ss:$72 sps:$4 sm:$0xff]  }
  0x2b   : > { %1861 = vmatprep.subr.bf16.mxu1 %v4503_v25  ;;  %v4558_v6 = vld [vmem:[%s4969_s29 + $0x1c8] ss:$72 sps:$4 sm:$0xff]   ;;  %v4566_v8 = vld [vmem:[%s4969_s29 + $0x13c] ss:$72 sps:$4 sm:$0xff]   ;;  %v4564_v10 = vld [vmem:[%s4969_s29 + $0x138] ss:$72 sps:$4 sm:$0xff]  }
  0x2c   : > { %v4561_v9 = vld [vmem:[%s4969_s29 + $0x130] ss:$72 sps:$4 sm:$0xff]   ;;  %v4569_v11 = vld [vmem:[%s4969_s29 + $0xa4] ss:$72 sps:$4 sm:$0xff]   ;;  %v4567_v13 = vld [vmem:[%s4969_s29 + $0xa0] ss:$72 sps:$4 sm:$0xff]  }
  0x2d   : > { %1821 = vmatpush1.bf16.msra.mxu0 %v4505_v26  ;;  %v4572_v12 = vld [vmem:[%s4969_s29 + $0xac] ss:$72 sps:$4 sm:$0xff]   ;;  %v4570_v14 = vld [vmem:[%s4969_s29 + $0xa8] ss:$72 sps:$4 sm:$0xff]   ;;  %v4578_v16 = vld [vmem:[%s4969_s29 + $0x1c] ss:$72 sps:$4 sm:$0xff]  }
  0x2e   : > { %1862 = vmatpush1.bf16.msra.mxu1 %v4506_v27  ;;  %1822 = vmatprep.subr.bf16.mxu0 %v4507_v28  ;;  %v4575_v15 = vld [vmem:[%s4969_s29 + $0x14] ss:$72 sps:$4 sm:$0xff]   ;;  %v876_v17 = vld [vmem:[%s4969_s29 + $0x520] sm:$0x33]  ;;  %v877_v18 = vld [vmem:[%s4969_s29 + $0x528] sm:$0x33] }
  0x2f   : > { %1863 = vmatprep.subr.bf16.mxu1 %v4509_v29  ;;  %v4573_v19 = vld [vmem:[%s4969_s29 + $0x10] ss:$72 sps:$4 sm:$0xff]   ;;  %v4129_v21 = vcombine.high %v876_v17, %v876_v17  ;;  %v4128_v22 = vcombine.low %v876_v17, %v876_v17  ;;  %v4131_v23 = vcombine.high %v877_v18, %v877_v18  ;;  %v4130_v24 = vcombine.low %v877_v18, %v877_v18  ;;  %v4585_v25 = vld [vmem:[%s4969_s29 + $0x494] ss:$72 sps:$4 sm:$0xff]   ;;  %v4597_v35 = vld [vmem:[%s4969_s29 + $0x384] ss:$72 sps:$4 sm:$0xff]  }
  0x30   : > { %v4576_v20 = vld [vmem:[%s4969_s29 + $0x18] ss:$72 sps:$4 sm:$0xff]   ;;  %v4588_v28 = vld [vmem:[%s4969_s29 + $0x49c] ss:$72 sps:$4 sm:$0xff]   ;;  %v4652_v17 = vld [vmem:[%s4969_s29 + $0x42c] ss:$72 sps:$4 sm:$0xff]  }
  0x31   : > { %1823 = vmatpush1.bf16.msra.mxu0 %v4511_v30  ;;  %v1769_v26 = vsel %vm1755_vm1, %v4128_v22, 0  ;;  %v1775_v27 = vsel %vm1755_vm1, %v4130_v24, 0  ;;  %v4583_v29 = vld [vmem:[%s4969_s29 + $0x490] ss:$72 sps:$4 sm:$0xff]   ;;  %v4606_v40 = vld [vmem:[%s4969_s29 + $0x2fc] ss:$72 sps:$4 sm:$0xff]  }
  0x32   : > { %1864 = vmatpush1.bf16.msra.mxu1 %v4512_v31  ;;  %1824 = vmatprep.subr.bf16.mxu0 %v4513_v32  ;;  %v4586_v30 = vld [vmem:[%s4969_s29 + $0x498] ss:$72 sps:$4 sm:$0xff]   ;;  %v4591_v31 = vld [vmem:[%s4969_s29 + $0x414] ss:$72 sps:$4 sm:$0xff]  }
  0x33   : > { %1865 = vmatprep.subr.bf16.mxu1 %v4515_v33  ;;  %v4594_v32 = vld [vmem:[%s4969_s29 + $0x41c] ss:$72 sps:$4 sm:$0xff]   ;;  %v4589_v33 = vld [vmem:[%s4969_s29 + $0x410] ss:$72 sps:$4 sm:$0xff]  }
  0x34   : > { %v4592_v34 = vld [vmem:[%s4969_s29 + $0x418] ss:$72 sps:$4 sm:$0xff]   ;;  %v4658_v22 = vld [vmem:[%s4969_s29 + $0x39c] ss:$72 sps:$4 sm:$0xff]  }
  0x35   : > { %1825 = vmatpush1.bf16.msra.mxu0 %v4517_v36  ;;  %v4600_v36 = vld [vmem:[%s4969_s29 + $0x38c] ss:$72 sps:$4 sm:$0xff]   ;;  %v4601_v41 = vld [vmem:[%s4969_s29 + $0x2f0] ss:$72 sps:$4 sm:$0xff]  }
  0x36   : > { %1866 = vmatpush1.bf16.msra.mxu1 %v4518_v37  ;;  %4142 = vmatprep.subr.msk.bf16.mxu0 %vm1755_vm1, %v4125_v38  ;;  %v4595_v37 = vld [vmem:[%s4969_s29 + $0x380] ss:$72 sps:$4 sm:$0xff]   ;;  %v2747_v18 = vld [vmem:[%s5555_s10 + $0x18] sm:$0xff] }
  0x37   : > { %4144 = vmatprep.subr.msk.bf16.mxu1 %vm1755_vm1, %v4127_v39  ;;  %v4598_v38 = vld [vmem:[%s4969_s29 + $0x388] ss:$72 sps:$4 sm:$0xff]   ;;  %v4603_v39 = vld [vmem:[%s4969_s29 + $0x2f4] ss:$72 sps:$4 sm:$0xff]   ;;  %v4656_v24 = vld [vmem:[%s4969_s29 + $0x398] ss:$72 sps:$4 sm:$0xff]  }
  0x39   : > { %1839 = vmatpush2.bf16.msra.mxu0 %v1757_v43  ;;  %v4609_v43 = vld [vmem:[%s4969_s29 + $0x264] ss:$72 sps:$4 sm:$0xff]  }
  0x3a   : > { %1880 = vmatpush2.bf16.msra.mxu1 %v1763_v44  ;;  %1840 = vmatprep.subr.bf16.mxu0 %v4523_v42  ;;  %v4604_v42 = vld [vmem:[%s4969_s29 + $0x2f8] ss:$72 sps:$4 sm:$0xff]   ;;  %v4612_v44 = vld [vmem:[%s4969_s29 + $0x26c] ss:$72 sps:$4 sm:$0xff]  }
  0x3b   : > { %1881 = vmatprep.subr.bf16.mxu1 %v4525_v45  ;;  %v4607_v45 = vld [vmem:[%s4969_s29 + $0x260] ss:$72 sps:$4 sm:$0xff]  }
  0x3d   : > { %1841 = vmatpush2.bf16.msra.mxu0 %v4527_v46  ;;  %v4610_v46 = vld [vmem:[%s4969_s29 + $0x268] ss:$72 sps:$4 sm:$0xff]  }
  0x3e   : > { %1882 = vmatpush2.bf16.msra.mxu1 %v4528_v47  ;;  %1892 = vmatprep.subr.bf16.mxu0 %v4533_v48  ;;  %v4615_v47 = vld [vmem:[%s4969_s29 + $0x1d4] ss:$72 sps:$4 sm:$0xff]  }
  0x3f   : > { %1933 = vmatprep.subr.bf16.mxu1 %v4536_v49  ;;  %v4618_v48 = vld [vmem:[%s4969_s29 + $0x1dc] ss:$72 sps:$4 sm:$0xff]   ;;  %v4613_v49 = vld [vmem:[%s4969_s29 + $0x1d0] ss:$72 sps:$4 sm:$0xff]  }
  0x40   : > { %1843 = vmatmul.mubr.bf16.vlgmr.msra.gmra.mxu0 %v5017_v50 }
  0x41   : > { %1884 = vmatmul.mubr.bf16.vlgmr.msra.gmra.mxu1 %v5017_v50  ;;  %1893 = vmatpush1.bf16.msra.mxu0 %v4531_v51  ;;  %v4616_v51 = vld [vmem:[%s4969_s29 + $0x1d8] ss:$72 sps:$4 sm:$0xff]  }
  0x42   : > { %1934 = vmatpush1.bf16.msra.mxu1 %v4534_v52  ;;  %1894 = vmatprep.subr.bf16.mxu0 %v4539_v53  ;;  %v4621_v52 = vld [vmem:[%s4969_s29 + $0x144] ss:$72 sps:$4 sm:$0xff]  }
  0x43   : > { %1935 = vmatprep.subr.bf16.mxu1 %v4542_v54  ;;  %4147 = vmatprep.mubr.msk.bf16.mxu0 %vm1751_vm0, %v4955_v2  ;;  %v4624_v53 = vld [vmem:[%s4969_s29 + $0x14c] ss:$72 sps:$4 sm:$0xff]   ;;  %v4619_v54 = vld [vmem:[%s4969_s29 + $0x140] ss:$72 sps:$4 sm:$0xff]  }
  0x44   : > { %4149 = vmatprep.mubr.msk.bf16.mxu1 %vm1751_vm0, %v4955_v2 }
  0x45   : > { %1895 = vmatpush1.bf16.msra.mxu0 %v4537_v55  ;;  %v4622_v55 = vld [vmem:[%s4969_s29 + $0x148] ss:$72 sps:$4 sm:$0xff]  }
  0x46   : > { %1936 = vmatpush1.bf16.msra.mxu1 %v4540_v56  ;;  %1896 = vmatprep.subr.bf16.mxu0 %v4545_v57  ;;  %v4627_v56 = vld [vmem:[%s4969_s29 + $0xb4] ss:$72 sps:$4 sm:$0xff]  }
  0x47   : > { %1937 = vmatprep.subr.bf16.mxu1 %v4548_v58  ;;  %v4630_v57 = vld [vmem:[%s4969_s29 + $0xbc] ss:$72 sps:$4 sm:$0xff]   ;;  %v4625_v58 = vld [vmem:[%s4969_s29 + $0xb0] ss:$72 sps:$4 sm:$0xff]  }
  0x49   : > { %1897 = vmatpush1.bf16.msra.mxu0 %v4543_v59  ;;  %v4628_v59 = vld [vmem:[%s4969_s29 + $0xb8] ss:$72 sps:$4 sm:$0xff]  }
  0x4a   : > { %1938 = vmatpush1.bf16.msra.mxu1 %v4546_v60  ;;  %1898 = vmatprep.subr.bf16.mxu0 %v4551_v61  ;;  %v4633_v60 = vld [vmem:[%s4969_s29 + $0x24] ss:$72 sps:$4 sm:$0xff]  }
  0x4b   : > { %1939 = vmatprep.subr.bf16.mxu1 %v4554_v62  ;;  %v4636_v61 = vld [vmem:[%s4969_s29 + $0x2c] ss:$72 sps:$4 sm:$0xff]  }
  0x4c   : > { %v878_v62 = vld [vmem:[%s4969_s29 + $0x530] sm:$0x33] }
  0x4d   : > { %1899 = vmatpush1.bf16.msra.mxu0 %v4549_v63  ;;  %v879_v63 = vld [vmem:[%s4969_s29 + $0x538] sm:$0x33] }
  0x4e   : > { %1940 = vmatpush1.bf16.msra.mxu1 %v4552_v0  ;;  %1900 = vmatprep.subr.bf16.mxu0 %v4557_v1  ;;  %v4631_v0 = vld [vmem:[%s4969_s29 + $0x20] ss:$72 sps:$4 sm:$0xff]  }
  0x4f   : > { %1941 = vmatprep.subr.bf16.mxu1 %v4560_v4  ;;  %v4634_v1 = vld [vmem:[%s4969_s29 + $0x28] ss:$72 sps:$4 sm:$0xff]   ;;  %v4133_v4 = vcombine.high %v878_v62, %v878_v62 }
  0x51   : > { %1901 = vmatpush1.bf16.msra.mxu0 %v4555_v5  ;;  %v4132_v5 = vcombine.low %v878_v62, %v878_v62  ;;  %v4704_v62 = vld [vmem:[%s4969_s29 + $0x4bc] ss:$72 sps:$4 sm:$0xff]  }
  0x52   : > { %1942 = vmatpush1.bf16.msra.mxu1 %v4558_v6  ;;  %1902 = vmatprep.subr.bf16.mxu0 %v4563_v7  ;;  %v4135_v6 = vcombine.high %v879_v63, %v879_v63  ;;  %v4134_v7 = vcombine.low %v879_v63, %v879_v63  ;;  %v4699_v63 = vld [vmem:[%s4969_s29 + $0x4b0] ss:$72 sps:$4 sm:$0xff]  }
  0x53   : > { %1943 = vmatprep.subr.bf16.mxu1 %v4566_v8  ;;  %v4643_v8 = vld [vmem:[%s4969_s29 + $0x4a4] ss:$72 sps:$4 sm:$0xff]  }
  0x55   : > { %1903 = vmatpush1.bf16.msra.mxu0 %v4561_v9  ;;  %v4646_v9 = vld [vmem:[%s4969_s29 + $0x4ac] ss:$72 sps:$4 sm:$0xff]  }
  0x56   : > { %1944 = vmatpush1.bf16.msra.mxu1 %v4564_v10  ;;  %1904 = vmatprep.subr.bf16.mxu0 %v4569_v11  ;;  %v2233_v10 = vld [vmem:[%s5583_s24] sm:$0xff]  ;;  %v1781_v11 = vsel %vm1755_vm1, %v4132_v5, 0 }
  0x57   : > { %1945 = vmatprep.subr.bf16.mxu1 %v4572_v12  ;;  %v1787_v12 = vsel %vm1755_vm1, %v4134_v7, 0  ;;  %2237 = vperm.xlu0 %4469, %v2233_v10   ;;  %v4710_v5 = vld [vmem:[%s4969_s29 + $0x3a4] ss:$72 sps:$4 sm:$0xff]   ;;  %v4713_v7 = vld [vmem:[%s4969_s29 + $0x314] ss:$72 sps:$4 sm:$0xff]  }
  0x58   : > { %v4714_v10 = vld [vmem:[%s4969_s29 + $0x280] ss:$72 sps:$4 sm:$0xff]  }
  0x59   : > { %1905 = vmatpush1.bf16.msra.mxu0 %v4567_v13  ;;  %v4641_v13 = vld [vmem:[%s4969_s29 + $0x4a0] ss:$72 sps:$4 sm:$0xff]  }
  0x5a   : > { %1946 = vmatpush1.bf16.msra.mxu1 %v4570_v14  ;;  %1906 = vmatprep.subr.bf16.mxu0 %v4575_v15  ;;  %v2313_v14 = vld [vmem:[%s5584_s1 + $0x8] sm:$0xff] }
  0x5b   : > { %1947 = vmatprep.subr.bf16.mxu1 %v4578_v16  ;;  %v4644_v15 = vld [vmem:[%s4969_s29 + $0x4a8] ss:$72 sps:$4 sm:$0xff]   ;;  %v4649_v16 = vld [vmem:[%s4969_s29 + $0x424] ss:$72 sps:$4 sm:$0xff]   ;;  %2321 = vperm.xlu0 %4469, %v2313_v14   ;;  %v4725_v14 = vld [vmem:[%s4969_s29 + $0xd4] ss:$72 sps:$4 sm:$0xff]  }
  0x5d   : > { %1907 = vmatpush1.bf16.msra.mxu0 %v4573_v19  ;;  %v4647_v19 = vld [vmem:[%s4969_s29 + $0x420] ss:$72 sps:$4 sm:$0xff]  }
  0x5e   : > { %1948 = vmatpush1.bf16.msra.mxu1 %v4576_v20  ;;  %4146 = vmatprep.subr.msk.bf16.mxu0 %vm1755_vm1, %v4129_v21  ;;  %v4650_v20 = vld [vmem:[%s4969_s29 + $0x428] ss:$72 sps:$4 sm:$0xff]   ;;  %v4655_v21 = vld [vmem:[%s4969_s29 + $0x394] ss:$72 sps:$4 sm:$0xff]  }
  0x5f   : > { %4148 = vmatprep.subr.msk.bf16.mxu1 %vm1755_vm1, %v4131_v23  ;;  %v4653_v23 = vld [vmem:[%s4969_s29 + $0x390] ss:$72 sps:$4 sm:$0xff]   ;;  %2765 = vperm.xlu0 %4469, %v2747_v18   ;;  %v4726_v18 = vld [vmem:[%s4969_s29 + $0x40] ss:$72 sps:$4 sm:$0xff]  }
  0x61   : > { %1921 = vmatpush2.bf16.msra.mxu0 %v1769_v26  ;;  %v4661_v26 = vld [vmem:[%s4969_s29 + $0x304] ss:$72 sps:$4 sm:$0xff]  }
  0x62   : > { %1962 = vmatpush2.bf16.msra.mxu1 %v1775_v27  ;;  %1922 = vmatprep.subr.bf16.mxu0 %v4585_v25  ;;  %v2745_v25 = vld [vmem:[%s5555_s10 + $0x8] sm:$0xff] }
  0x63   : > { %1963 = vmatprep.subr.bf16.mxu1 %v4588_v28  ;;  %v4664_v27 = vld [vmem:[%s4969_s29 + $0x30c] ss:$72 sps:$4 sm:$0xff]   ;;  %v4659_v28 = vld [vmem:[%s4969_s29 + $0x300] ss:$72 sps:$4 sm:$0xff]   ;;  %2755 = vperm.xlu0 %4469, %v2745_v25  }
  0x65   : > { %1923 = vmatpush2.bf16.msra.mxu0 %v4583_v29  ;;  %v4662_v29 = vld [vmem:[%s4969_s29 + $0x308] ss:$72 sps:$4 sm:$0xff]  }
  0x66   : > { %1964 = vmatpush2.bf16.msra.mxu1 %v4586_v30  ;;  %1974 = vmatprep.subr.bf16.mxu0 %v4591_v31  ;;  %v2844_v30 = vld [vmem:[%s5557_s12 + $0x8] sm:$0xff]  ;;  %v4667_v31 = vld [vmem:[%s4969_s29 + $0x274] ss:$72 sps:$4 sm:$0xff]  }
  0x67   : > { %2015 = vmatprep.subr.bf16.mxu1 %v4594_v32  ;;  %v4670_v32 = vld [vmem:[%s4969_s29 + $0x27c] ss:$72 sps:$4 sm:$0xff]   ;;  %2854 = vperm.xlu0 %4469, %v2844_v30  }
  0x68   : > { %1925 = vmatmul.mubr.bf16.vlgmr.msra.gmra.mxu0 %v5017_v50 }
  0x69   : > { %1966 = vmatmul.mubr.bf16.vlgmr.msra.gmra.mxu1 %v5017_v50  ;;  %1975 = vmatpush1.bf16.msra.mxu0 %v4589_v33  ;;  %v4665_v33 = vld [vmem:[%s4969_s29 + $0x270] ss:$72 sps:$4 sm:$0xff]  }
  0x6a   : > { %2016 = vmatpush1.bf16.msra.mxu1 %v4592_v34  ;;  %1976 = vmatprep.subr.bf16.mxu0 %v4597_v35  ;;  %v4668_v34 = vld [vmem:[%s4969_s29 + $0x278] ss:$72 sps:$4 sm:$0xff]  }
  0x6b   : > { %2017 = vmatprep.subr.bf16.mxu1 %v4600_v36  ;;  %4151 = vmatprep.mubr.msk.bf16.mxu0 %vm1751_vm0, %v4955_v2  ;;  %v2846_v35 = vld [vmem:[%s5557_s12 + $0x18] sm:$0xff]  ;;  %v4673_v36 = vld [vmem:[%s4969_s29 + $0x1e4] ss:$72 sps:$4 sm:$0xff]  }
  0x6c   : > { %4153 = vmatprep.mubr.msk.bf16.mxu1 %vm1751_vm0, %v4955_v2  ;;  %2864 = vperm.xlu0 %4469, %v2846_v35  }
  0x6d   : > { %1977 = vmatpush1.bf16.msra.mxu0 %v4595_v37  ;;  %v4676_v37 = vld [vmem:[%s4969_s29 + $0x1ec] ss:$72 sps:$4 sm:$0xff]  }
  0x6e   : > { %2018 = vmatpush1.bf16.msra.mxu1 %v4598_v38  ;;  %1978 = vmatprep.subr.bf16.mxu0 %v4603_v39  ;;  %v4671_v38 = vld [vmem:[%s4969_s29 + $0x1e0] ss:$72 sps:$4 sm:$0xff]  }
  0x6f   : > { %2019 = vmatprep.subr.bf16.mxu1 %v4606_v40  ;;  %v4674_v39 = vld [vmem:[%s4969_s29 + $0x1e8] ss:$72 sps:$4 sm:$0xff]   ;;  %v4679_v40 = vld [vmem:[%s4969_s29 + $0x154] ss:$72 sps:$4 sm:$0xff]  }
  0x71   : > { %1979 = vmatpush1.bf16.msra.mxu0 %v4601_v41  ;;  %v4682_v41 = vld [vmem:[%s4969_s29 + $0x15c] ss:$72 sps:$4 sm:$0xff]  }
  0x72   : > { %2020 = vmatpush1.bf16.msra.mxu1 %v4604_v42  ;;  %1980 = vmatprep.subr.bf16.mxu0 %v4609_v43  ;;  %v4677_v42 = vld [vmem:[%s4969_s29 + $0x150] ss:$72 sps:$4 sm:$0xff]  }
  0x73   : > { %2021 = vmatprep.subr.bf16.mxu1 %v4612_v44  ;;  %v4680_v43 = vld [vmem:[%s4969_s29 + $0x158] ss:$72 sps:$4 sm:$0xff]   ;;  %v4685_v44 = vld [vmem:[%s4969_s29 + $0xc4] ss:$72 sps:$4 sm:$0xff]  }
  0x75   : > { %1981 = vmatpush1.bf16.msra.mxu0 %v4607_v45  ;;  %v4688_v45 = vld [vmem:[%s4969_s29 + $0xcc] ss:$72 sps:$4 sm:$0xff]  }
  0x76   : > { %2022 = vmatpush1.bf16.msra.mxu1 %v4610_v46  ;;  %1982 = vmatprep.subr.bf16.mxu0 %v4615_v47  ;;  %v4683_v46 = vld [vmem:[%s4969_s29 + $0xc0] ss:$72 sps:$4 sm:$0xff]  }
  0x77   : > { %2023 = vmatprep.subr.bf16.mxu1 %v4618_v48  ;;  %v4686_v47 = vld [vmem:[%s4969_s29 + $0xc8] ss:$72 sps:$4 sm:$0xff]   ;;  %v4691_v48 = vld [vmem:[%s4969_s29 + $0x34] ss:$72 sps:$4 sm:$0xff]  }
  0x79   : > { %1983 = vmatpush1.bf16.msra.mxu0 %v4613_v49  ;;  %v4694_v49 = vld [vmem:[%s4969_s29 + $0x3c] ss:$72 sps:$4 sm:$0xff]  }
  0x7a   : > { %2024 = vmatpush1.bf16.msra.mxu1 %v4616_v51  ;;  %1984 = vmatprep.subr.bf16.mxu0 %v4621_v52  ;;  %v880_v51 = vld [vmem:[%s4969_s29 + $0x540] sm:$0x33]  ;;  %v881_v52 = vld [vmem:[%s4969_s29 + $0x548] sm:$0x33] }
  0x7b   : > { %2025 = vmatprep.subr.bf16.mxu1 %v4624_v53  ;;  %v4689_v53 = vld [vmem:[%s4969_s29 + $0x30] ss:$72 sps:$4 sm:$0xff]  }
  0x7d   : > { %1985 = vmatpush1.bf16.msra.mxu0 %v4619_v54  ;;  %v4692_v54 = vld [vmem:[%s4969_s29 + $0x38] ss:$72 sps:$4 sm:$0xff]  }
  0x7e   : > { %2026 = vmatpush1.bf16.msra.mxu1 %v4622_v55  ;;  %1986 = vmatprep.subr.bf16.mxu0 %v4627_v56  ;;  %v4137_v55 = vcombine.high %v880_v51, %v880_v51  ;;  %v4136_v56 = vcombine.low %v880_v51, %v880_v51 }
  0x7f   : > { %2027 = vmatprep.subr.bf16.mxu1 %v4630_v57  ;;  %v4139_v57 = vcombine.high %v881_v52, %v881_v52 }
  0x81   : > { %1987 = vmatpush1.bf16.msra.mxu0 %v4625_v58  ;;  %v4138_v58 = vcombine.low %v881_v52, %v881_v52 }
  0x82   : > { %2028 = vmatpush1.bf16.msra.mxu1 %v4628_v59  ;;  %1988 = vmatprep.subr.bf16.mxu0 %v4633_v60  ;;  %v1793_v59 = vsel %vm1755_vm1, %v4136_v56, 0 }
  0x83   : > { %2029 = vmatprep.subr.bf16.mxu1 %v4636_v61  ;;  %v1799_v60 = vsel %vm1755_vm1, %v4138_v58, 0  ;;  %v4701_v61 = vld [vmem:[%s4969_s29 + $0x4b4] ss:$72 sps:$4 sm:$0xff]  }
  0x85   : > { %1989 = vmatpush1.bf16.msra.mxu0 %v4631_v0  ;;  %v4702_v0 = vld [vmem:[%s4969_s29 + $0x4b8] ss:$72 sps:$4 sm:$0xff]  }
  0x86   : > { %2030 = vmatpush1.bf16.msra.mxu1 %v4634_v1  ;;  %4150 = vmatprep.subr.msk.bf16.mxu0 %vm1755_vm1, %v4133_v4  ;;  %v4707_v1 = vld [vmem:[%s4969_s29 + $0x434] ss:$72 sps:$4 sm:$0xff]   ;;  %v4705_v4 = vld [vmem:[%s4969_s29 + $0x430] ss:$72 sps:$4 sm:$0xff]  }
  0x87   : > { %4152 = vmatprep.subr.msk.bf16.mxu1 %vm1755_vm1, %v4135_v6  ;;  %v4708_v6 = vld [vmem:[%s4969_s29 + $0x3a0] ss:$72 sps:$4 sm:$0xff]  }
  0x89   : > { %2003 = vmatpush2.bf16.msra.mxu0 %v1781_v11  ;;  %v4719_v11 = vld [vmem:[%s4969_s29 + $0x1f4] ss:$72 sps:$4 sm:$0xff]  }
  0x8a   : > { %2044 = vmatpush2.bf16.msra.mxu1 %v1787_v12  ;;  %2004 = vmatprep.subr.bf16.mxu0 %v4643_v8  ;;  %v4711_v8 = vld [vmem:[%s4969_s29 + $0x310] ss:$72 sps:$4 sm:$0xff]   ;;  %v4722_v12 = vld [vmem:[%s4969_s29 + $0x164] ss:$72 sps:$4 sm:$0xff]  }
  0x8b   : > { %2045 = vmatprep.subr.bf16.mxu1 %v4646_v9  ;;  %v4716_v9 = vld [vmem:[%s4969_s29 + $0x284] ss:$72 sps:$4 sm:$0xff]  }
  0x8d   : > { %2005 = vmatpush2.bf16.msra.mxu0 %v4641_v13  ;;  %v4720_v13 = vld [vmem:[%s4969_s29 + $0x160] ss:$72 sps:$4 sm:$0xff]  }
  0x8e   : > { %2046 = vmatpush2.bf16.msra.mxu1 %v4644_v15  ;;  %2056 = vmatprep.subr.bf16.mxu0 %v4649_v16  ;;  %v4723_v15 = vld [vmem:[%s4969_s29 + $0xd0] ss:$72 sps:$4 sm:$0xff]   ;;  %v4728_v16 = vld [vmem:[%s4969_s29 + $0x44] ss:$72 sps:$4 sm:$0xff]  }
  0x8f   : > { %2097 = vmatprep.subr.bf16.mxu1 %v4652_v17  ;;  %v882_v17 = vld [vmem:[%s4969_s29 + $0x550] sm:$0x33] }
  0x90   : > { %2007 = vmatmul.mubr.bf16.vlgmr.msra.gmra.mxu0 %v5017_v50 }
  0x91   : > { %2048 = vmatmul.mubr.bf16.vlgmr.msra.gmra.mxu1 %v5017_v50  ;;  %2057 = vmatpush1.bf16.msra.mxu0 %v4647_v19  ;;  %v4141_v19 = vcombine.high %v882_v17, %v882_v17 }
  0x92   : > { %2098 = vmatpush1.bf16.msra.mxu1 %v4650_v20  ;;  %2058 = vmatprep.subr.bf16.mxu0 %v4655_v21  ;;  %v4140_v20 = vcombine.low %v882_v17, %v882_v17 }
  0x93   : > { %2099 = vmatprep.subr.bf16.mxu1 %v4658_v22  ;;  %4155 = vmatprep.mubr.msk.bf16.mxu0 %vm1751_vm0, %v4955_v2  ;;  %v4733_v22 = vld [vmem:[%s4969_s29 + $0x4c4] ss:$72 sps:$4 sm:$0xff]  }
  0x94   : > { %4157 = vmatprep.mubr.msk.bf16.mxu1 %vm1751_vm0, %v4955_v2  ;;  %v1805_v21 = vsel %vm1755_vm1, %v4140_v20, 0 }
  0x95   : > { %2059 = vmatpush1.bf16.msra.mxu0 %v4653_v23  ;;  %v4731_v23 = vld [vmem:[%s4969_s29 + $0x4c0] ss:$72 sps:$4 sm:$0xff]  }
  0x96   : > { %2100 = vmatpush1.bf16.msra.mxu1 %v4656_v24  ;;  %2060 = vmatprep.subr.bf16.mxu0 %v4661_v26  ;;  %v5206_v24 = vpop.permute.xlu0 %887 }
  0x97   : > { %2101 = vmatprep.subr.bf16.mxu1 %v4664_v27 }
  0x99   : > { %2061 = vmatpush1.bf16.msra.mxu0 %v4659_v28 }
  0x9a   : > { %2102 = vmatpush1.bf16.msra.mxu1 %v4662_v29  ;;  %2062 = vmatprep.subr.bf16.mxu0 %v4667_v31 }
  0x9b   : > { %2103 = vmatprep.subr.bf16.mxu1 %v4670_v32 }
  0x9d   : > { %2063 = vmatpush1.bf16.msra.mxu0 %v4665_v33 }
  0x9e   : > { %2104 = vmatpush1.bf16.msra.mxu1 %v4668_v34  ;;  %2064 = vmatprep.subr.bf16.mxu0 %v4673_v36 }
  0x9f   : > { %2105 = vmatprep.subr.bf16.mxu1 %v4676_v37 }
  0xa1   : > { %2065 = vmatpush1.bf16.msra.mxu0 %v4671_v38 }
  0xa2   : > { %2106 = vmatpush1.bf16.msra.mxu1 %v4674_v39  ;;  %2066 = vmatprep.subr.bf16.mxu0 %v4679_v40 }
  0xa3   : > { %2107 = vmatprep.subr.bf16.mxu1 %v4682_v41 }
  0xa5   : > { %2067 = vmatpush1.bf16.msra.mxu0 %v4677_v42 }
  0xa6   : > { %2108 = vmatpush1.bf16.msra.mxu1 %v4680_v43  ;;  %2068 = vmatprep.subr.bf16.mxu0 %v4685_v44 }
  0xa7   : > { %2109 = vmatprep.subr.bf16.mxu1 %v4688_v45 }
  0xa9   : > { %2069 = vmatpush1.bf16.msra.mxu0 %v4683_v46 }
  0xaa   : > { %2110 = vmatpush1.bf16.msra.mxu1 %v4686_v47  ;;  %2070 = vmatprep.subr.bf16.mxu0 %v4691_v48 }
  0xab   : > { %2111 = vmatprep.subr.bf16.mxu1 %v4694_v49 }
  0xad   : > { %2071 = vmatpush1.bf16.msra.mxu0 %v4689_v53 }
  0xae   : > { %2112 = vmatpush1.bf16.msra.mxu1 %v4692_v54  ;;  %4154 = vmatprep.subr.msk.bf16.mxu0 %vm1755_vm1, %v4137_v55 }
  0xaf   : > { %4156 = vmatprep.subr.msk.bf16.mxu1 %vm1755_vm1, %v4139_v57 }
  0xb1   : > { %2085 = vmatpush2.bf16.msra.mxu0 %v1793_v59 }
  0xb2   : > { %2126 = vmatpush2.bf16.msra.mxu1 %v1799_v60  ;;  %2086 = vmatprep.subr.bf16.mxu0 %v4701_v61 }
  0xb3   : > { %2127 = vmatprep.subr.bf16.mxu1 %v4704_v62 }
  0xb5   : > { %2087 = vmatpush2.bf16.msra.mxu0 %v4699_v63 }
  0xb6   : > { %2128 = vmatpush2.bf16.msra.mxu1 %v4702_v0  ;;  %2138 = vmatprep.subr.bf16.mxu0 %v4707_v1 }
  0xb8   : > { %2089 = vmatmul.mubr.bf16.vlgmr.msra.gmra.mxu0 %v5017_v50 }
  0xb9   : > { %2130 = vmatmul.mubr.bf16.vlgmr.msra.gmra.mxu1 %v5017_v50  ;;  %2139 = vmatpush1.bf16.msra.mxu0 %v4705_v4 }
  0xba   : > { %4159 = vmatprep.mubr.msk.bf16.mxu0 %vm1751_vm0, %v4955_v2  ;;  %2140 = vmatprep.subr.bf16.mxu0 %v4710_v5  ;;  %v4717_v2 = vld [vmem:[%s4969_s29 + $0x1f0] ss:$72 sps:$4 sm:$0xff]  }
  0xbb   : > { %2293 = vmatprep.mubr.bf16.mxu1 %v4814_v3 }
  0xbd   : > { %2141 = vmatpush1.bf16.msra.mxu0 %v4708_v6  ;;  %v2234_v6 = vld [vmem:[%s5583_s24 + $0x8] sm:$0xff] }
  0xbe   : > { %2142 = vmatprep.subr.bf16.mxu0 %v4713_v7  ;;  %2242 = vperm.xlu1 %4470, %v2234_v6  }
  0xc1   : > { %2143 = vmatpush1.bf16.msra.mxu0 %v4711_v8 }
  0xc2   : > { %2144 = vmatprep.subr.bf16.mxu0 %v4716_v9  ;;  %v2312_v9 = vld [vmem:[%s5584_s1] sm:$0xff] }
  0xc3   : > { %2316 = vperm.xlu1 %4470, %v2312_v9  }
  0xc5   : > { %2145 = vmatpush1.bf16.msra.mxu0 %v4714_v10 }
  0xc6   : > { %2146 = vmatprep.subr.bf16.mxu0 %v4719_v11  ;;  %v2746_v11 = vld [vmem:[%s5555_s10 + $0x10] sm:$0xff] }
  0xc7   : > { %2760 = vperm.xlu1 %4470, %v2746_v11  }
  0xc9   : > { %2147 = vmatpush1.bf16.msra.mxu0 %v4717_v2  ;;  %v2744_v2 = vld [vmem:[%s5555_s10] sm:$0xff] }
  0xca   : > { %2148 = vmatprep.subr.bf16.mxu0 %v4722_v12  ;;  %v2843_v12 = vld [vmem:[%s5557_s12] sm:$0xff] }
  0xcb   : > { %2750 = vperm.xlu1 %4470, %v2744_v2  }
  0xcd   : > { %2149 = vmatpush1.bf16.msra.mxu0 %v4720_v13  ;;  %v2845_v13 = vld [vmem:[%s5557_s12 + $0x10] sm:$0xff] }
  0xce   : > { %2150 = vmatprep.subr.bf16.mxu0 %v4725_v14 }
  0xcf   : > { %2849 = vperm.xlu1 %4470, %v2843_v12  }
  0xd1   : > { %2151 = vmatpush1.bf16.msra.mxu0 %v4723_v15 }
  0xd2   : > { %2152 = vmatprep.subr.bf16.mxu0 %v4728_v16 }
  0xd3   : > { %2859 = vperm.xlu1 %4470, %v2845_v13   ;;  %v4734_v13 = vld [vmem:[%s5585_s26] sm:$0xff]  }
  0xd5   : > { %2153 = vmatpush1.bf16.msra.mxu0 %v4726_v18 }
  0xd6   : > { %4158 = vmatprep.subr.msk.bf16.mxu0 %vm1755_vm1, %v4141_v19 }
  0xd9   : > { %2167 = vmatpush2.bf16.msra.mxu0 %v1805_v21 }
  0xda   : > { %2168 = vmatprep.subr.bf16.mxu0 %v4733_v22 }
  0xdd   : > { %2169 = vmatpush2.bf16.msra.mxu0 %v4731_v23 }
  0xe0   : > { %2171 = vmatmul.mubr.bf16.vlgmr.msra.gmra.mxu0 %v5017_v50 }
 0x100   : > { %v1844_v25 = vpop.f32.mrf.mxu0 }
 0x101   : > { %v1885_v26 = vpop.f32.mrf.mxu1  ;;  %v1845_v27 = vadd.f32 %v1844_v25, %v5206_v24 }
 0x102   : > { %v1886_v28 = vadd.f32 %v1885_v26, %v5206_v24  ;;  %v1846_v29 = vpop.f32.mrf.mxu0 }
 0x103   : > { %v1887_v30 = vpop.f32.mrf.mxu1  ;;  %v1847_v31 = vadd.f32 %v1846_v29, %v5206_v24  ;;  %v2179_v33 = vmax.f32 %v1845_v27, 0.0 }
 0x104   : > { %v1888_v32 = vadd.f32 %v1887_v30, %v5206_v24  ;;  %v2181_v34 = vmax.f32 %v1886_v28, 0.0  ;;  %v1848_v35 = vpop.f32.mrf.mxu0 }
 0x105   : > { %v1889_v36 = vpop.f32.mrf.mxu1  ;;  %v2180_v37 = vmax.f32 %v1847_v31, 0.0  ;;  %v2197_v38 = vpack.c.bf16 %v2179_v33, %v2179_v33 }
 0x106   : > { %v2182_v50 = vmax.f32 %v1888_v32, 0.0  ;;  %v2199_v39 = vpack.c.bf16 %v2181_v34, %v2181_v34  ;;  %v1849_v40 = vpop.f32.mrf.mxu0 }
 0x107   : > { %v1890_v41 = vpop.f32.mrf.mxu1  ;;  %v2198_v42 = vpack.c.bf16 %v2180_v37, %v2180_v37 }
 0x108   : > { %v2200_v43 = vpack.c.bf16 %v2182_v50, %v2182_v50  ;;  %v2215_v44 = vmax.bf16 %v2199_v39, %v2197_v38 }
 0x10a   : > { %v2216_v45 = vmax.bf16 %v2200_v43, %v2198_v42 }
 0x128   : > { %v1926_v46 = vpop.f32.mrf.mxu0 }
 0x129   : > { %v1967_v47 = vpop.f32.mrf.mxu1  ;;  %v1927_v48 = vadd.f32 %v1926_v46, %v5206_v24 }
 0x12a   : > { %v1968_v49 = vadd.f32 %v1967_v47, %v5206_v24  ;;  %v1928_v51 = vpop.f32.mrf.mxu0 }
 0x12b   : > { %v1969_v52 = vpop.f32.mrf.mxu1  ;;  %v2183_v53 = vmax.f32 %v1927_v48, 0.0  ;;  %v1929_v54 = vadd.f32 %v1928_v51, %v5206_v24 }
 0x12c   : > { %v2185_v55 = vmax.f32 %v1968_v49, 0.0  ;;  %v1970_v56 = vadd.f32 %v1969_v52, %v5206_v24  ;;  %v1930_v57 = vpop.f32.mrf.mxu0 }
 0x12d   : > { %v1971_v58 = vpop.f32.mrf.mxu1  ;;  %v2201_v59 = vpack.c.bf16 %v2183_v53, %v2183_v53  ;;  %v2184_v60 = vmax.f32 %v1929_v54, 0.0 }
 0x12e   : > { %v2203_v61 = vpack.c.bf16 %v2185_v55, %v2185_v55  ;;  %v2186_v62 = vmax.f32 %v1970_v56, 0.0  ;;  %v1931_v63 = vpop.f32.mrf.mxu0 }
 0x12f   : > { %v1972_v0 = vpop.f32.mrf.mxu1  ;;  %v2217_v1 = vmax.bf16 %v2215_v44, %v2201_v59  ;;  %v2202_v4 = vpack.c.bf16 %v2184_v60, %v2184_v60 }
 0x130   : > { %v2204_v5 = vpack.c.bf16 %v2186_v62, %v2186_v62 }
 0x131   : > { %v2218_v7 = vmax.bf16 %v2216_v45, %v2202_v4  ;;  %v2219_v8 = vmax.bf16 %v2217_v1, %v2203_v61 }
 0x133   : > { %v2220_v10 = vmax.bf16 %v2218_v7, %v2204_v5 }
 0x150   : > { %v2008_v14 = vpop.f32.mrf.mxu0 }
 0x151   : > { %v2049_v15 = vpop.f32.mrf.mxu1  ;;  %v2009_v16 = vadd.f32 %v2008_v14, %v5206_v24 }
 0x152   : > { %v2050_v17 = vadd.f32 %v2049_v15, %v5206_v24  ;;  %v2010_v18 = vpop.f32.mrf.mxu0  ;;  %v2238_v15 = vpop.permute.xlu0 %2237 }
 0x153   : > { %v2051_v19 = vpop.f32.mrf.mxu1  ;;  %v2187_v20 = vmax.f32 %v2009_v16, 0.0  ;;  %v2011_v21 = vadd.f32 %v2010_v18, %v5206_v24  ;;  %v2243_v16 = vpop.permute.xlu1 %2242 }
 0x154   : > { %v2189_v22 = vmax.f32 %v2050_v17, 0.0  ;;  %v2052_v23 = vadd.f32 %v2051_v19, %v5206_v24  ;;  %v2012_v25 = vpop.f32.mrf.mxu0 }
 0x155   : > { %v2053_v26 = vpop.f32.mrf.mxu1  ;;  %v2205_v27 = vpack.c.bf16 %v2187_v20, %v2187_v20  ;;  %v2188_v28 = vmax.f32 %v2011_v21, 0.0 }
 0x156   : > { %v2207_v29 = vpack.c.bf16 %v2189_v22, %v2189_v22  ;;  %v2190_v30 = vmax.f32 %v2052_v23, 0.0  ;;  %v2013_v31 = vpop.f32.mrf.mxu0 }
 0x157   : > { %v2054_v32 = vpop.f32.mrf.mxu1  ;;  %v2221_v33 = vmax.bf16 %v2219_v8, %v2205_v27  ;;  %v2206_v34 = vpack.c.bf16 %v2188_v28, %v2188_v28  ;;  %v4737_v31 = vld [vmem:[%s5586_s27 + $0x38] sm:$0xff]  }
 0x158   : > { %v2208_v35 = vpack.c.bf16 %v2190_v30, %v2190_v30  ;;  %v4735_v30 = vld [vmem:[%s5587_s3] sm:$0xff]   ;;  %v4738_v32 = vld [vmem:[%s5586_s27 + $0x70] sm:$0xff]  }
 0x159   : > { %v2222_v36 = vmax.bf16 %v2220_v10, %v2206_v34  ;;  %v2223_v37 = vmax.bf16 %v2221_v33, %v2207_v29  ;;  %v4736_v29 = vld [vmem:[%s5586_s27 + $0x78] sm:$0xff]   ;;  %v4739_v33 = vld [vmem:[%s5586_s27 + $0x30] sm:$0xff]   ;;  %v4740_v34 = vld [vmem:[%s5586_s27 + $0x68] sm:$0xff]  }
 0x15b   : > { %v2224_v50 = vmax.bf16 %v2222_v36, %v2208_v35  ;;  %v4741_v35 = vld [vmem:[%s5586_s27 + $0x28] sm:$0xff]   ;;  %v4742_v36 = vld [vmem:[%s5586_s27 + $0x60] sm:$0xff]  }
 0x178   : > { %v2090_v38 = vpop.f32.mrf.mxu0 }
 0x179   : > { %v2131_v39 = vpop.f32.mrf.mxu1  ;;  %v2091_v46 = vadd.f32 %v2090_v38, %v5206_v24  ;;  %v4745_v38 = vld [vmem:[%s5586_s27 + $0x18] sm:$0xff]  }
 0x17a   : > { %v2092_v40 = vpop.f32.mrf.mxu0  ;;  %v2132_v49 = vadd.f32 %v2131_v39, %v5206_v24  ;;  %v4746_v39 = vld [vmem:[%s5586_s27 + $0x50] sm:$0xff]  }
 0x17b   : > { %v2133_v41 = vpop.f32.mrf.mxu1  ;;  %v2093_v47 = vadd.f32 %v2092_v40, %v5206_v24  ;;  %v2191_v48 = vmax.f32 %v2091_v46, 0.0  ;;  %v4747_v40 = vld [vmem:[%s5586_s27 + $0x10] sm:$0xff]  }
 0x17c   : > { %v2094_v42 = vpop.f32.mrf.mxu0  ;;  %v2134_v52 = vadd.f32 %v2133_v41, %v5206_v24  ;;  %v2193_v54 = vmax.f32 %v2132_v49, 0.0  ;;  %v4748_v41 = vld [vmem:[%s5586_s27 + $0x48] sm:$0xff]  }
 0x17d   : > { %v2135_v43 = vpop.f32.mrf.mxu1  ;;  %v2192_v51 = vmax.f32 %v2093_v47, 0.0  ;;  %v2209_v53 = vpack.c.bf16 %v2191_v48, %v2191_v48  ;;  %v4749_v42 = vld [vmem:[%s5586_s27 + $0x8] sm:$0xff]   ;;  %v2322_v47 = vpop.permute.xlu0 %2321 }
 0x17e   : > { %v2095_v44 = vpop.f32.mrf.mxu0  ;;  %v2194_v56 = vmax.f32 %v2134_v52, 0.0  ;;  %v2211_v59 = vpack.c.bf16 %v2193_v54, %v2193_v54  ;;  %v4750_v43 = vld [vmem:[%s5586_s27 + $0x40] sm:$0xff]   ;;  %v2317_v48 = vpop.permute.xlu1 %2316 }
 0x17f   : > { %v2136_v45 = vpop.f32.mrf.mxu1  ;;  %v2210_v55 = vpack.c.bf16 %v2192_v51, %v2192_v51  ;;  %v2225_v58 = vmax.bf16 %v2223_v37, %v2209_v53  ;;  %v4743_v37 = vld [vmem:[%s5586_s27 + $0x20] sm:$0xff]  }
 0x180   : > { %v2212_v63 = vpack.c.bf16 %v2194_v56, %v2194_v56  ;;  %v4751_v44 = vld [vmem:[%s5586_s27] sm:$0xff]  }
 0x181   : > { %v2226_v62 = vmax.bf16 %v2224_v50, %v2210_v55  ;;  %v2227_v5 = vmax.bf16 %v2225_v58, %v2211_v59  ;;  %v4744_v50 = vld [vmem:[%s5586_s27 + $0x58] sm:$0xff]  }
 0x183   : > { %v2228_v9 = vmax.bf16 %v2226_v62, %v2212_v63  ;;  %v4752_v62 = vld [vmem:[%s5553_s8 + $0x18] sm:$0xff]   ;;  %v4815_v63 = vmov 0.0  }
 0x184   : > { %4329 = vmatprep.subr.bf16.mxu0 %v4815_v63  ;;  %4337 = vmatprep.mubr.msk.bf16.mxu0 %vm4816_vm5, %v4815_v63 }
 0x1a0   : > { %v2172_v57 = vpop.f32.mrf.mxu0 }
 0x1a1   : > { %v2173_v60 = vadd.f32 %v2172_v57, %v5206_v24 }
 0x1a2   : > { %v2174_v61 = vpop.f32.mrf.mxu0 }
 0x1a3   : > { %v2195_v0 = vmax.f32 %v2173_v60, 0.0  ;;  %v2175_v1 = vadd.f32 %v2174_v61, %v5206_v24 }
 0x1a4   : > { %v2176_v4 = vpop.f32.mrf.mxu0 }
 0x1a5   : > { %v2213_v6 = vpack.c.bf16 %v2195_v0, %v2195_v0  ;;  %v2196_v7 = vmax.f32 %v2175_v1, 0.0  ;;  %v4753_v0 = vld [vmem:[%s5553_s8 + $0x38] sm:$0xff]   ;;  %v4754_v1 = vld [vmem:[%s5553_s8 + $0x10] sm:$0xff]  }
 0x1a6   : > { %v2177_v8 = vpop.f32.mrf.mxu0  ;;  %4330 = vmatpush3.bf16.msra.mxu0 %v4753_v0  ;;  %v4755_v4 = vld [vmem:[%s5553_s8 + $0x30] sm:$0xff]  }
 0x1a7   : > { %v2229_v10 = vmax.bf16 %v2227_v5, %v2213_v6  ;;  %v2214_v11 = vpack.c.bf16 %v2196_v7, %v2196_v7  ;;  %4331 = vmatprep.subr.bf16.mxu0 %v4815_v63  ;;  %v4756_v5 = vld [vmem:[%s5553_s8 + $0x8] sm:$0xff]   ;;  %v4758_v7 = vld [vmem:[%s5553_s8] sm:$0xff]  }
 0x1a8   : > { %v4757_v6 = vld [vmem:[%s5553_s8 + $0x28] sm:$0xff]   ;;  %v4759_v8 = vld [vmem:[%s5553_s8 + $0x20] sm:$0xff]  }
 0x1a9   : > { %v2230_v2 = vmax.bf16 %v2228_v9, %v2214_v11  ;;  %v2256_v12 = vsel %vm2254_vm2, %v2229_v10, 0 }
 0x1aa   : > { %4332 = vmatpush3.bf16.msra.mxu0 %v4755_v4 }
 0x1ab   : > { %4161 = vmatprep.subr.msk.bf16.mxu1 %vm2254_vm2, %v2230_v2  ;;  %4333 = vmatprep.subr.bf16.mxu0 %v4815_v63 }
 0x1ac   : > { %2276 = vmatpush1.bf16.msra.mxu1 %v2256_v12 }
 0x1ae   : > { %4334 = vmatpush3.bf16.msra.mxu0 %v4757_v6 }
 0x1af   : > { %4162 = vmatmul.mubr.msk.bf16.vlgmr.msra.gmra.mxu1 %vm2250_vm3, %v4734_v13  ;;  %4335 = vmatprep.subr.bf16.mxu0 %v4815_v63 }
 0x1b0   : > { %2365 = vmatprep.mubr.bf16.mxu1 %v4814_v3 }
 0x1b2   : > { %4336 = vmatpush3.bf16.msra.mxu0 %v4759_v8 }
 0x26f   : > { %v2295_v24 = vpop.f32.mrf.mxu1 }
 0x270   : > { %v2296_v20 = vadd.f32 %v2295_v24, %v2238_v15 }
 0x271   : > { %v2297_v14 = vpop.f32.mrf.mxu1 }
 0x272   : > { %v2298_v18 = vadd.f32 %v2297_v14, %v2238_v15  ;;  %v2304_v27 = vmax.f32 %v2296_v20, 0.0 }
 0x273   : > { %v2299_v17 = vpop.f32.mrf.mxu1 }
 0x274   : > { %v2300_v19 = vadd.f32 %v2299_v17, %v2243_v16  ;;  %v2305_v25 = vmax.f32 %v2298_v18, 0.0 }
 0x275   : > { %v2301_v21 = vpop.f32.mrf.mxu1 }
 0x276   : > { %v2302_v22 = vadd.f32 %v2301_v21, %v2243_v16  ;;  %v2306_v23 = vmax.f32 %v2300_v19, 0.0 }
 0x278   : > { %v2307_v26 = vmax.f32 %v2302_v22, 0.0  ;;  %v2308_v3 = vpack.c.bf16 %v2306_v23, %v2304_v27 }
 0x27a   : > { %v2309_v28 = vpack.c.bf16 %v2307_v26, %v2305_v25 }
 0x27c   : > { %2347 = vmatprep.subr.bf16.mxu1 %v2309_v28 }
 0x27d   : > { %2348 = vmatpush1.bf16.msra.mxu1 %v2308_v3 }
 0x27e   : > { %4247 = vmatprep.subr.bf16.mxu1 %v4736_v29 }
 0x280   : > { %4164 = vmatmul.mubr.msk.bf16.vlgmr.msra.gmra.mxu1 %vm2329_vm4, %v4735_v30 }
 0x281   : > { %4248 = vmatpush3.bf16.msra.mxu1 %v4737_v31 }
 0x282   : > { %4249 = vmatprep.subr.bf16.mxu1 %v4738_v32 }
 0x285   : > { %4250 = vmatpush3.bf16.msra.mxu1 %v4739_v33 }
 0x286   : > { %4251 = vmatprep.subr.bf16.mxu1 %v4740_v34 }
 0x289   : > { %4252 = vmatpush3.bf16.msra.mxu1 %v4741_v35 }
 0x28a   : > { %4253 = vmatprep.subr.bf16.mxu1 %v4742_v36 }
 0x28d   : > { %4254 = vmatpush3.bf16.msra.mxu1 %v4743_v37  ;;  %v4760_v37 = vld [vmem:[%s5554_s9] sm:$0xff]  }
 0x28e   : > { %4255 = vmatprep.subr.bf16.mxu1 %v4744_v50 }
 0x291   : > { %4256 = vmatpush3.bf16.msra.mxu1 %v4745_v38 }
 0x292   : > { %4257 = vmatprep.subr.bf16.mxu1 %v4746_v39 }
 0x295   : > { %4258 = vmatpush3.bf16.msra.mxu1 %v4747_v40 }
 0x296   : > { %4259 = vmatprep.subr.bf16.mxu1 %v4748_v41 }
 0x299   : > { %4260 = vmatpush3.bf16.msra.mxu1 %v4749_v42 }
 0x29a   : > { %4261 = vmatprep.subr.bf16.mxu1 %v4750_v43 }
 0x29d   : > { %4262 = vmatpush3.bf16.msra.mxu1 %v4751_v44 }
 0x29e   : > { %4341 = vmatprep.subr.bf16.mxu1 %v4815_v63 }
 0x340   : > { %v2367_v45 = vpop.f32.mrf.mxu1 }
 0x341   : > { %v2368_v53 = vadd.f32 %v2367_v45, %v2317_v48 }
 0x342   : > { %v2369_v46 = vpop.f32.mrf.mxu1 }
 0x343   : > { %v2370_v51 = vadd.f32 %v2369_v46, %v2317_v48  ;;  %v2376_v59 = vmax.f32 %v2368_v53, 0.0 }
 0x344   : > { %v2371_v49 = vpop.f32.mrf.mxu1 }
 0x345   : > { %v2372_v52 = vadd.f32 %v2371_v49, %v2322_v47  ;;  %v2377_v57 = vmax.f32 %v2370_v51, 0.0  ;;  %v2733_v49 = vlaneseq }
 0x346   : > { %v2373_v54 = vpop.f32.mrf.mxu1 }
 0x347   : > { %v2374_v55 = vadd.f32 %v2373_v54, %v2322_v47  ;;  %v2378_v56 = vmax.f32 %v2372_v52, 0.0  ;;  %v2734_v51 = vshrl.u32 %v2733_v49, 7 }
 0x349   : > { %v2379_v58 = vmax.f32 %v2374_v55, 0.0  ;;  %v2380_v61 = vpack.c.bf16 %v2378_v56, %v2376_v59  ;;  %v2735_v52 = vsub.s32 0, %v2734_v51  ;;  %v4762_v59 = vld [vmem:[%s5556_s11] sm:$0xff]  }
 0x34b   : > { %v2381_v60 = vpack.c.bf16 %v2379_v58, %v2377_v57  ;;  %v4761_v58 = vld [vmem:[%s5554_s9 + $0x8] sm:$0xff]  }
 0x34d   : > { %2542 = vmatprep.mubr.bf16.mxu1 %v2381_v60  ;;  %v4764_v60 = vld [vmem:[%s5558_s13 + $0x18] sm:$0xff]  }
 0x34e   : > { %2543 = vmatmul.mubr.bf16.vlgmr.msra.gmra.mxu1 %v2380_v61  ;;  %v2761_v61 = vpop.permute.xlu1 %2760 }
 0x34f   : > { %4342 = vmatpush3.bf16.msra.mxu1 %v4752_v62  ;;  %4349 = vmatprep.mubr.msk.bf16.mxu1 %vm4816_vm5, %v4815_v63  ;;  %v2766_v62 = vpop.permute.xlu0 %2765 }
 0x350   : > { %4343 = vmatprep.subr.bf16.mxu1 %v4815_v63 }
 0x353   : > { %4344 = vmatpush3.bf16.msra.mxu1 %v4754_v1 }
 0x354   : > { %4345 = vmatprep.subr.bf16.mxu1 %v4815_v63 }
 0x357   : > { %4346 = vmatpush3.bf16.msra.mxu1 %v4756_v5  ;;  %v2751_v5 = vpop.permute.xlu1 %2750 }
 0x358   : > { %4347 = vmatprep.subr.bf16.mxu1 %v4815_v63 }
 0x35b   : > { %4348 = vmatpush3.bf16.msra.mxu1 %v4758_v7 }
 0x35c   : > { %4367 = vmatprep.subr.bf16.mxu1 %v4764_v60 }
 0x40e   : > { %v4263_v9 = vpop.f32.mrf.mxu1 }
 0x410   : > { %v4264_v10 = vpop.f32.mrf.mxu1 }
 0x411   : > { %v4265_v12 = vadd.f32 %v4264_v10, %v4263_v9  ;;  %v2756_v9 = vpop.permute.xlu0 %2755 }
 0x412   : > { %v4266_v11 = vpop.f32.mrf.mxu1 }
 0x414   : > { %v4267_v2 = vpop.f32.mrf.mxu1 }
 0x415   : > { %v4268_v13 = vadd.f32 %v4267_v2, %v4266_v11 }
 0x417   : > { %v2551_v24 = vpack.c.bf16 %v4268_v13, %v4265_v12 }
 0x419   : > { %v2552_v14 = vunpack.c.l.bf16 %v2551_v24  ;;  %v2553_v15 = vunpack.c.h.bf16 %v2551_v24 }
 0x41b   : > { %v2555_v16 = vsel %vm2554_vm6, %v2552_v14, -inf  ;;  %v2556_v17 = vsel %vm2554_vm6, %v2553_v15, -inf  ;;  %v2565_v18 = vsel %vm2554_vm6, %v2552_v14, 0.0  ;;  %v2566_v19 = vsel %vm2554_vm6, %v2553_v15, 0.0 }
 0x41c   : > { %v2557_v20 = vmax.f32 %v2555_v16, %v2556_v17  ;;  %v2567_v21 = vadd.f32 %v2566_v19, %v2565_v18  ;;  %v4763_v16 = vld [vmem:[%s5556_s11 + $0x8] sm:$0xff]   ;;  %v4765_v17 = vld [vmem:[%s5558_s13 + $0x10] sm:$0xff]   ;;  %v4767_v19 = vld [vmem:[%s5558_s13] sm:$0xff]  }
 0x41d   : > { %v4766_v18 = vld [vmem:[%s5558_s13 + $0x8] sm:$0xff]  }
 0x41e   : > { %v2558_v22 = vrot.slane %v2557_v20, 4  ;;  %v2568_v23 = vrot.slane %v2567_v21, 4 }
 0x420   : > { %v2559_v25 = vmax.f32 %v2557_v20, %v2558_v22  ;;  %v2569_v26 = vadd.f32 %v2568_v23, %v2567_v21  ;;  %v2855_v20 = vpop.permute.xlu0 %2854  ;;  %v2850_v21 = vpop.permute.xlu1 %2849 }
 0x422   : > { %v2560_v27 = vrot.slane %v2559_v25, 2  ;;  %v2570_v28 = vrot.slane %v2569_v26, 2 }
 0x424   : > { %v2561_v29 = vmax.f32 %v2559_v25, %v2560_v27  ;;  %v2571_v3 = vadd.f32 %v2570_v28, %v2569_v26  ;;  %v2865_v25 = vpop.permute.xlu0 %2864  ;;  %v2860_v27 = vpop.permute.xlu1 %2859 }
 0x426   : > { %v2562_v30 = vrot.slane %v2561_v29, 1  ;;  %v2572_v31 = vrot.slane %v2571_v3, 1 }
 0x428   : > { %v2563_v32 = vmax.f32 %v2561_v29, %v2562_v30  ;;  %v2573_v33 = vadd.f32 %v2572_v31, %v2571_v3 }
 0x42a   : > { %v2564_v34 = vpack.c.bf16 %v2563_v32, %v2563_v32  ;;  %v2575_v35 = vmul.f32 0.0625, %v2573_v33 }
 0x42c   : > { %4350 = vmatmul.mubr.msk.bf16.vlgmr.msra.gmra.mxu1 %vm2554_vm6, %v2564_v34  ;;  %v2576_v36 = vpack.c.bf16 %v2575_v35, %v2575_v35 }
 0x42d   : > { %4368 = vmatpush3.bf16.msra.mxu1 %v4764_v60 }
 0x42e   : > { %4338 = vmatmul.mubr.msk.bf16.vlgmr.msra.gmra.mxu0 %vm2554_vm6, %v2576_v36  ;;  %4369 = vmatprep.subr.bf16.mxu1 %v4765_v17 }
 0x42f   : > { %4355 = vmatprep.mubr.msk.bf16.mxu0 %vm2329_vm4, %v4760_v37 }
 0x431   : > { %4370 = vmatpush3.bf16.msra.mxu1 %v4765_v17 }
 0x432   : > { %4371 = vmatprep.subr.bf16.mxu1 %v4766_v18 }
 0x435   : > { %4372 = vmatpush3.bf16.msra.mxu1 %v4766_v18 }
 0x436   : > { %4373 = vmatprep.subr.bf16.mxu1 %v4767_v19 }
 0x439   : > { %4374 = vmatpush3.bf16.msra.mxu1 %v4767_v19 }
 0x4ec   : > { %v2721_v50 = vpop.f32.mrf.mxu1 }
 0x4ee   : > { %v2654_v38 = vpop.f32.mrf.mxu0  ;;  %v4351_v39 = vpop.f32.mrf.mxu1 }
 0x4ef   : > { %v2722_v40 = vadd.f32 %v2721_v50, %v2654_v38 }
 0x4f0   : > { %v4339_v41 = vpop.f32.mrf.mxu0  ;;  %v2724_v42 = vpop.f32.mrf.mxu1 }
 0x4f1   : > { %v4191_v43 = vmul.f32 -1.442695, %v2722_v40 }
 0x4f2   : > { %v2657_v44 = vpop.f32.mrf.mxu0  ;;  %v4352_v45 = vpop.f32.mrf.mxu1 }
 0x4f3   : > { %4782 = vpow2.f32 %v4191_v43 }
 0x4f4   : > { %v4340_v46 = vpop.f32.mrf.mxu0 }
 0x500   : > { %v4783_v47 = vpop.eup %4782 }
 0x501   : > { %v2730_v48 = vadd.f32 1.0, %v4783_v47 }
 0x503   : > { %4784 = vrcp.f32 %v2730_v48 }
 0x510   : > { %v4785_v53 = vpop.eup %4784 }
 0x511   : > { %v2736_v54 = vrot.slane %v4785_v53, %v2735_v52 }
 0x513   : > { %v2737_v55 = vmul.f32 %v2736_v54, %v2552_v14  ;;  %v2738_v56 = vmul.f32 %v2736_v54, %v2553_v15 }
 0x515   : > { %v2739_v57 = vpack.c.bf16 %v2738_v56, %v2737_v55 }
 0x517   : > { %4353 = vmatprep.subr.bf16.mxu0 %v2739_v57 }
 0x518   : > { %4354 = vmatpush3.bf16.msra.mxu0 %v2739_v57 }
 0x51b   : > { %4356 = vmatmul.mubr.msk.bf16.vlgmr.msra.gmra.mxu0 %vm2329_vm4, %v4761_v58 }
 0x51c   : > { %4363 = vmatprep.mubr.msk.bf16.mxu0 %vm2877_vm7, %v4762_v59 }
 0x5db   : > { %v4357_v0 = vpop.f32.mrf.mxu0 }
 0x5dc   : > { %v2827_v4 = vadd.f32 %v4357_v0, %v2761_v61 }
 0x5dd   : > { %v2818_v1 = vpop.f32.mrf.mxu0 }
 0x5de   : > { %v2819_v7 = vadd.f32 %v2818_v1, %v2751_v5  ;;  %v2835_v11 = vmax.f32 %v2827_v4, 0.0 }
 0x5df   : > { %v4358_v6 = vpop.f32.mrf.mxu0 }
 0x5e0   : > { %v2830_v8 = vadd.f32 %v4358_v6, %v2766_v62  ;;  %v2833_v13 = vmax.f32 %v2819_v7, 0.0  ;;  %v4768_v62 = vld [vmem:[%s5559_s14] sm:$0xff]  }
 0x5e1   : > { %v2821_v10 = vpop.f32.mrf.mxu0 }
 0x5e2   : > { %v2836_v2 = vmax.f32 %v2830_v8, 0.0  ;;  %v2822_v12 = vadd.f32 %v2821_v10, %v2756_v9 }
 0x5e4   : > { %v2838_v24 = vpack.c.bf16 %v2836_v2, %v2835_v11  ;;  %v2834_v14 = vmax.f32 %v2822_v12, 0.0  ;;  %v4769_v2 = vld [vmem:[%s5560_s15] sm:$0xff]  }
 0x5e6   : > { %v2837_v15 = vpack.c.bf16 %v2834_v14, %v2833_v13  ;;  %4359 = vmatprep.subr.bf16.mxu0 %v2838_v24 }
 0x5e7   : > { %4360 = vmatpush3.bf16.msra.mxu0 %v2838_v24 }
 0x5e8   : > { %4361 = vmatprep.subr.bf16.mxu0 %v2837_v15 }
 0x5eb   : > { %4362 = vmatpush3.bf16.msra.mxu0 %v2837_v15 }
 0x5ec   : > { %4379 = vmatprep.subr.bf16.mxu0 %v4815_v63 }
 0x5ee   : > { %4364 = vmatmul.mubr.msk.bf16.vlgmr.msra.gmra.mxu0 %vm2877_vm7, %v4763_v16 }
 0x5ef   : > { %4383 = vmatprep.mubr.msk.bf16.mxu0 %vm4816_vm5, %v4815_v63 }
 0x6ae   : > { %v4365_v22 = vpop.f32.mrf.mxu0 }
 0x6af   : > { %v2927_v3 = vadd.f32 %v4365_v22, %v2860_v27 }
 0x6b0   : > { %v2918_v23 = vpop.f32.mrf.mxu0 }
 0x6b1   : > { %v2919_v28 = vadd.f32 %v2918_v23, %v2850_v21  ;;  %v2935_v35 = vmax.f32 %v2927_v3, 0.0 }
 0x6b2   : > { %v4366_v26 = vpop.f32.mrf.mxu0 }
 0x6b3   : > { %v2930_v29 = vadd.f32 %v4366_v26, %v2865_v25  ;;  %v2933_v33 = vmax.f32 %v2919_v28, 0.0 }
 0x6b4   : > { %v2921_v30 = vpop.f32.mrf.mxu0 }
 0x6b5   : > { %v2922_v31 = vadd.f32 %v2921_v30, %v2855_v20  ;;  %v2936_v32 = vmax.f32 %v2930_v29, 0.0 }
 0x6b7   : > { %v2934_v34 = vmax.f32 %v2922_v31, 0.0  ;;  %v2938_v37 = vpack.c.bf16 %v2936_v32, %v2935_v35 }
 0x6b9   : > { %v2937_v36 = vpack.c.bf16 %v2934_v34, %v2933_v33 }
 0x6bb   : > { %4375 = vmatprep.mubr.msk.bf16.mxu1 %vm2554_vm6, %v2937_v36 }
 0x6bc   : > { %4376 = vmatmul.mubr.msk.bf16.vlgmr.msra.gmra.mxu1 %vm2554_vm6, %v2938_v37 }
 0x6bd   : > { %4397 = vmatprep.mubr.msk.bf16.mxu1 %vm2329_vm4, %v4769_v2 }
 0x77c   : > { %v4377_v50 = vpop.f32.mrf.mxu1 }
 0x77e   : > { %v3011_v38 = vpop.f32.mrf.mxu1 }
 0x780   : > { %v4378_v39 = vpop.f32.mrf.mxu1 }
 0x781   : > { %v3027_v40 = vpack.c.bf16 %v4378_v39, %v4377_v50 }
 0x782   : > { %v3014_v41 = vpop.f32.mrf.mxu1 }
 0x783   : > { %v5375_v42 = vunpack.c.l.bf16 %v3027_v40  ;;  %v5377_v43 = vunpack.c.h.bf16 %v3027_v40  ;;  %v3026_v44 = vpack.c.bf16 %v3014_v41, %v3011_v38 }
 0x785   : > { %v5379_v45 = vunpack.c.l.bf16 %v3026_v44  ;;  %v5381_v46 = vunpack.c.h.bf16 %v3026_v44  ;;  %v3041_v47 = vsel %vm2329_vm4, %v5377_v43, -inf  ;;  %v3038_v48 = vsel %vm2329_vm4, %v5375_v42, -inf }
 0x786   : > { %3042 = vmax.xlane.f32.xlu0 %v3041_v47  ;;  %3039 = vmax.xlane.f32.xlu1 %v3038_v48  ;;  %v3055_v52 = vsel %vm2329_vm4, %v5377_v43, 0.0  ;;  %v3052_v53 = vsel %vm2329_vm4, %v5375_v42, 0.0 }
 0x787   : > { %v3035_v49 = vsel %vm2329_vm4, %v5381_v46, -inf  ;;  %v3032_v51 = vsel %vm2329_vm4, %v5379_v45, -inf  ;;  %v3049_v54 = vsel %vm2329_vm4, %v5381_v46, 0.0  ;;  %v3046_v55 = vsel %vm2329_vm4, %v5379_v45, 0.0 }
 0x78a   : > { %3036 = vmax.xlane.f32.xlu1 %v3035_v49  ;;  %3033 = vmax.xlane.f32.xlu0 %v3032_v51 }
 0x78e   : > { %3056 = vadd.xlane.f32.xlu1 %v3055_v52  ;;  %3053 = vadd.xlane.f32.xlu0 %v3052_v53 }
 0x792   : > { %3050 = vadd.xlane.f32.xlu1 %v3049_v54  ;;  %3047 = vadd.xlane.f32.xlu0 %v3046_v55 }
 0x80f   : > { %v3043_v56 = vpop.xlane.xlu0 %3042  ;;  %v3040_v57 = vpop.xlane.xlu1 %3039 }
 0x810   : > { %v3045_v58 = vpack.c.bf16 %v3043_v56, %v3040_v57  ;;  %v3345_v57 = vld [vmem:[%s5562_s17 + $0x38] sm:$0xff] }
 0x812   : > { %4380 = vmatpush3.bf16.msra.mxu0 %v3045_v58  ;;  %v3344_v58 = vld [vmem:[%s5562_s17 + $0x30] sm:$0xff] }
 0x813   : > { %v3037_v59 = vpop.xlane.xlu1 %3036  ;;  %v3034_v60 = vpop.xlane.xlu0 %3033  ;;  %4381 = vmatprep.subr.bf16.mxu0 %v4815_v63 }
 0x814   : > { %v3044_v61 = vpack.c.bf16 %v3037_v59, %v3034_v60  ;;  %v4771_v59 = vld [vmem:[%s5561_s16] sm:$0xff]   ;;  %v3343_v60 = vld [vmem:[%s5562_s17 + $0x28] sm:$0xff] }
 0x816   : > { %4382 = vmatpush3.bf16.msra.mxu0 %v3044_v61  ;;  %v3342_v61 = vld [vmem:[%s5562_s17 + $0x20] sm:$0xff] }
 0x817   : > { %v3057_v0 = vpop.xlane.xlu1 %3056  ;;  %v3054_v1 = vpop.xlane.xlu0 %3053  ;;  %4387 = vmatprep.subr.bf16.mxu0 %v4815_v63 }
 0x818   : > { %v3061_v4 = vmul.f32 0.0625, %v3057_v0  ;;  %v3060_v5 = vmul.f32 0.0625, %v3054_v1  ;;  %v3340_v0 = vld [vmem:[%s5562_s17 + $0x10] sm:$0xff]  ;;  %v3339_v1 = vld [vmem:[%s5562_s17 + $0x8] sm:$0xff] }
 0x819   : > { %4384 = vmatmul.mubr.msk.bf16.vlgmr.msra.gmra.mxu0 %vm2877_vm7, %v4768_v62 }
 0x81a   : > { %v3063_v6 = vpack.c.bf16 %v3061_v4, %v3060_v5  ;;  %4391 = vmatprep.mubr.msk.bf16.mxu0 %vm4816_vm5, %v4815_v63  ;;  %v3338_v4 = vld [vmem:[%s5562_s17] sm:$0xff]  ;;  %v3504_v5 = vld [vmem:[%s5564_s19 + $0x8] sm:$0xff] }
 0x81b   : > { %v3051_v7 = vpop.xlane.xlu1 %3050  ;;  %v3048_v8 = vpop.xlane.xlu0 %3047 }
 0x81c   : > { %v3059_v9 = vmul.f32 0.0625, %v3051_v7  ;;  %v3058_v10 = vmul.f32 0.0625, %v3048_v8  ;;  %4388 = vmatpush3.bf16.msra.mxu0 %v3063_v6  ;;  %v3503_v6 = vld [vmem:[%s5564_s19] sm:$0xff]  ;;  %v3506_v7 = vld [vmem:[%s5564_s19 + $0x18] sm:$0xff]  ;;  %v3505_v8 = vld [vmem:[%s5564_s19 + $0x10] sm:$0xff] }
 0x81d   : > { %4389 = vmatprep.subr.bf16.mxu0 %v4815_v63  ;;  %v4770_v63 = vld [vmem:[%s5560_s15 + $0x8] sm:$0xff]  }
 0x81e   : > { %v3062_v11 = vpack.c.bf16 %v3059_v9, %v3058_v10  ;;  %v3508_v9 = vld [vmem:[%s5564_s19 + $0x28] sm:$0xff]  ;;  %v3507_v10 = vld [vmem:[%s5564_s19 + $0x20] sm:$0xff] }
 0x820   : > { %4390 = vmatpush3.bf16.msra.mxu0 %v3062_v11  ;;  %v3510_v11 = vld [vmem:[%s5564_s19 + $0x38] sm:$0xff] }
 0x823   : > { %4392 = vmatmul.mubr.msk.bf16.vlgmr.msra.gmra.mxu0 %vm2877_vm7, %v4768_v62  ;;  %v3341_v62 = vld [vmem:[%s5562_s17 + $0x18] sm:$0xff] }
 0x824   : > { %4403 = vmatprep.mubr.msk.bf16.mxu0 %vm2329_vm4, %v4769_v2  ;;  %v3509_v2 = vld [vmem:[%s5564_s19 + $0x30] sm:$0xff] }
 0x8d9   : > { %v3112_v12 = vpop.f32.mrf.mxu0 }
 0x8da   : > { %v3119_v14 = vmax.f32 %v3112_v12, 0.0  ;;  %v3754_v12 = vld [vmem:[%s5567_s22 + $0x8] sm:$0xff] }
 0x8db   : > { %v4385_v13 = vpop.f32.mrf.mxu0 }
 0x8dc   : > { %v3753_v13 = vld [vmem:[%s5567_s22] sm:$0xff] }
 0x8dd   : > { %v3115_v24 = vpop.f32.mrf.mxu0 }
 0x8de   : > { %v3120_v15 = vmax.f32 %v3115_v24, 0.0  ;;  %v3756_v24 = vld [vmem:[%s5567_s22 + $0x18] sm:$0xff] }
 0x8df   : > { %v4386_v16 = vpop.f32.mrf.mxu0 }
 0x8e0   : > { %v3121_v17 = vpack.c.bf16 %v3120_v15, %v3119_v14  ;;  %v3755_v14 = vld [vmem:[%s5567_s22 + $0x10] sm:$0xff] }
 0x8e2   : > { %4401 = vmatprep.subr.bf16.mxu0 %v3121_v17 }
 0x8e3   : > { %v3156_v18 = vpop.f32.mrf.mxu0  ;;  %4402 = vmatpush3.bf16.msra.mxu0 %v3121_v17 }
 0x8e4   : > { %v3163_v21 = vmax.f32 %v3156_v18, 0.0 }
 0x8e5   : > { %v4393_v19 = vpop.f32.mrf.mxu0 }
 0x8e6   : > { %4404 = vmatmul.mubr.msk.bf16.vlgmr.msra.gmra.mxu0 %vm2329_vm4, %v4770_v63 }
 0x8e7   : > { %v3159_v20 = vpop.f32.mrf.mxu0 }
 0x8e8   : > { %v3164_v22 = vmax.f32 %v3159_v20, 0.0 }
 0x8e9   : > { %v4394_v23 = vpop.f32.mrf.mxu0 }
 0x8ea   : > { %v3165_v25 = vpack.c.bf16 %v3164_v22, %v3163_v21 }
 0x8ec   : > { %4395 = vmatprep.subr.bf16.mxu1 %v3165_v25 }
 0x8ed   : > { %4396 = vmatpush3.bf16.msra.mxu1 %v3165_v25  ;;  %v4772_v25 = vld [vmem:[%s5561_s16 + $0x8] sm:$0xff]  }
 0x8f0   : > { %4398 = vmatmul.mubr.msk.bf16.vlgmr.msra.gmra.mxu1 %vm2329_vm4, %v4770_v63 }
 0x8f1   : > { %4411 = vmatprep.mubr.msk.bf16.mxu1 %vm2877_vm7, %v4771_v59 }
 0x9a6   : > { %v4405_v26 = vpop.f32.mrf.mxu0 }
 0x9a8   : > { %v3265_v27 = vpop.f32.mrf.mxu0 }
 0x9aa   : > { %v4406_v30 = vpop.f32.mrf.mxu0 }
 0x9ac   : > { %v3268_v36 = vpop.f32.mrf.mxu0 }
 0x9b0   : > { %v4399_v28 = vpop.f32.mrf.mxu1 }
 0x9b1   : > { %v3274_v29 = vadd.f32 %v4405_v26, %v4399_v28 }
 0x9b2   : > { %v3216_v3 = vpop.f32.mrf.mxu1 }
 0x9b3   : > { %v4217_v31 = vmul.f32 -1.442695, %v3274_v29  ;;  %v3266_v32 = vadd.f32 %v3265_v27, %v3216_v3 }
 0x9b4   : > { %v4400_v33 = vpop.f32.mrf.mxu1 }
 0x9b5   : > { %4786 = vpow2.f32 %v4217_v31  ;;  %v4215_v34 = vmul.f32 -1.442695, %v3266_v32  ;;  %v3277_v35 = vadd.f32 %v4406_v30, %v4400_v33 }
 0x9b6   : > { %v3219_v37 = vpop.f32.mrf.mxu1 }
 0x9b7   : > { %v4218_v50 = vmul.f32 -1.442695, %v3277_v35  ;;  %v3269_v38 = vadd.f32 %v3268_v36, %v3219_v37  ;;  %4788 = vpow2.f32 %v4215_v34 }
 0x9b9   : > { %4790 = vpow2.f32 %v4218_v50  ;;  %v4216_v39 = vmul.f32 -1.442695, %v3269_v38 }
 0x9bb   : > { %4792 = vpow2.f32 %v4216_v39 }
 0x9c2   : > { %v4787_v40 = vpop.eup %4786 }
 0x9c3   : > { %v3294_v41 = vadd.f32 1.0, %v4787_v40 }
 0x9c4   : > { %v4789_v44 = vpop.eup %4788 }
 0x9c5   : > { %4794 = vrcp.f32 %v3294_v41  ;;  %v3292_v51 = vadd.f32 1.0, %v4789_v44 }
 0x9c6   : > { %v4791_v47 = vpop.eup %4790 }
 0x9c7   : > { %v3295_v48 = vadd.f32 1.0, %v4791_v47 }
 0x9c8   : > { %v4793_v49 = vpop.eup %4792 }
 0x9c9   : > { %4796 = vrcp.f32 %v3295_v48  ;;  %v3293_v52 = vadd.f32 1.0, %v4793_v49 }
 0x9cb   : > { %4798 = vrcp.f32 %v3293_v52 }
 0x9cc   : > { %4800 = vrcp.f32 %v3292_v51 }
 0x9d2   : > { %v4795_v53 = vpop.eup %4794 }
 0x9d3   : > { %3316 = vperm.xlu0 %4469, %v4795_v53  }
 0x9d6   : > { %v4797_v54 = vpop.eup %4796 }
 0x9d7   : > { %3321 = vperm.xlu1 %4470, %v4797_v54  }
 0x9d8   : > { %v4799_v55 = vpop.eup %4798 }
 0x9d9   : > { %3311 = vperm.xlu0 %4469, %v4799_v55   ;;  %v4801_v56 = vpop.eup %4800 }
 0x9db   : > { %3306 = vperm.xlu1 %4470, %v4801_v56  }
 0x9dd   : > { %3383 = vperm.xlu0 %4469, %v3345_v57  }
 0x9df   : > { %3378 = vperm.xlu1 %4470, %v3344_v58  }
 0x9e1   : > { %3373 = vperm.xlu0 %4469, %v3343_v60  }
 0x9e3   : > { %3368 = vperm.xlu1 %4470, %v3342_v61  }
 0x9e5   : > { %3363 = vperm.xlu0 %4469, %v3341_v62  }
 0x9e7   : > { %3358 = vperm.xlu1 %4470, %v3340_v0  }
 0x9e9   : > { %3353 = vperm.xlu0 %4469, %v3339_v1   ;;  %v4776_v1 = vld [vmem:[%s5563_s18 + $0x8] sm:$0xff]  }
 0x9eb   : > { %3348 = vperm.xlu1 %4470, %v3338_v4   ;;  %v4777_v4 = vld [vmem:[%s5563_s18 + $0x10] sm:$0xff]  }
 0x9ed   : > { %3518 = vperm.xlu0 %4469, %v3504_v5   ;;  %v4778_v5 = vld [vmem:[%s5563_s18 + $0x18] sm:$0xff]  }
 0x9ef   : > { %3513 = vperm.xlu1 %4470, %v3503_v6   ;;  %v4779_v6 = vld [vmem:[%s5565_s20] sm:$0xff]  }
 0x9f1   : > { %3528 = vperm.xlu0 %4469, %v3506_v7  }
 0x9f3   : > { %3523 = vperm.xlu1 %4470, %v3505_v8  }
 0x9f5   : > { %3538 = vperm.xlu0 %4469, %v3508_v9  }
 0x9f7   : > { %3533 = vperm.xlu1 %4470, %v3507_v10  }
 0x9f9   : > { %3548 = vperm.xlu0 %4469, %v3510_v11  }
 0x9fb   : > { %3543 = vperm.xlu1 %4470, %v3509_v2  }
 0x9fd   : > { %3764 = vperm.xlu0 %4469, %v3754_v12  }
 0x9ff   : > { %3759 = vperm.xlu1 %4470, %v3753_v13  }
 0xa01   : > { %3774 = vperm.xlu0 %4469, %v3756_v24  }
 0xa03   : > { %3769 = vperm.xlu1 %4470, %v3755_v14  }
 0xa4e   : > { %v3317_v15 = vpop.permute.xlu0 %3316 }
 0xa4f   : > { %v3326_v17 = vmul.f32 %v3317_v15, %v5375_v42  ;;  %v4773_v42 = vld [vmem:[%s5561_s16 + $0x10] sm:$0xff]  }
 0xa52   : > { %v3322_v16 = vpop.permute.xlu1 %3321 }
 0xa53   : > { %v3327_v63 = vmul.f32 %v3322_v16, %v5377_v43  ;;  %v4774_v43 = vld [vmem:[%s5561_s16 + $0x18] sm:$0xff]  }
 0xa54   : > { %v3312_v18 = vpop.permute.xlu0 %3311 }
 0xa55   : > { %v3329_v19 = vpack.c.bf16 %v3327_v63, %v3326_v17  ;;  %v3325_v21 = vmul.f32 %v3312_v18, %v5381_v46 }
 0xa56   : > { %v3307_v20 = vpop.permute.xlu1 %3306 }
 0xa57   : > { %v3324_v22 = vmul.f32 %v3307_v20, %v5379_v45  ;;  %4407 = vmatprep.subr.bf16.mxu1 %v3329_v19  ;;  %v4775_v45 = vld [vmem:[%s5563_s18] sm:$0xff]  }
 0xa58   : > { %4408 = vmatpush3.bf16.msra.mxu1 %v3329_v19  ;;  %4427 = vmatprep.mubr.msk.bf16.mxu0 %vm2554_vm6, %v4775_v45  ;;  %v3384_v46 = vpop.permute.xlu0 %3383 }
 0xa59   : > { %v3328_v23 = vpack.c.bf16 %v3325_v21, %v3324_v22 }
 0xa5a   : > { %v3379_v27 = vpop.permute.xlu1 %3378 }
 0xa5b   : > { %4409 = vmatprep.subr.bf16.mxu1 %v3328_v23 }
 0xa5c   : > { %4410 = vmatpush3.bf16.msra.mxu1 %v3328_v23  ;;  %v3374_v3 = vpop.permute.xlu0 %3373 }
 0xa5d   : > { %4435 = vmatprep.subr.bf16.mxu1 %v4779_v6 }
 0xa5e   : > { %v3369_v31 = vpop.permute.xlu1 %3368 }
 0xa5f   : > { %4412 = vmatmul.mubr.msk.bf16.vlgmr.msra.gmra.mxu1 %vm2877_vm7, %v4772_v25 }
 0xa60   : > { %4415 = vmatprep.mubr.msk.bf16.mxu1 %vm2877_vm7, %v4773_v42  ;;  %v3364_v35 = vpop.permute.xlu0 %3363  ;;  %4436 = vmatpush3.bf16.msra.mxu1 %v4779_v6 }
 0xa62   : > { %v3359_v38 = vpop.permute.xlu1 %3358 }
 0xa64   : > { %v3354_v53 = vpop.permute.xlu0 %3353 }
 0xa66   : > { %v3349_v57 = vpop.permute.xlu1 %3348 }
 0xa67   : > { %4416 = vmatmul.mubr.msk.bf16.gmra.mxu1 %vm2877_vm7, %v4774_v43 }
 0xa68   : > { %v3519_v7 = vpop.permute.xlu0 %3518 }
 0xa6a   : > { %v3514_v8 = vpop.permute.xlu1 %3513 }
 0xa6c   : > { %v3529_v9 = vpop.permute.xlu0 %3528 }
 0xa6e   : > { %v3524_v11 = vpop.permute.xlu1 %3523 }
 0xa70   : > { %v3539_v14 = vpop.permute.xlu0 %3538 }
 0xa72   : > { %v3534_v17 = vpop.permute.xlu1 %3533 }
 0xa74   : > { %v3549_v42 = vpop.permute.xlu0 %3548 }
 0xb1f   : > { %v4413_v26 = vpop.f32.mrf.mxu1 }
 0xb20   : > { %v3461_v48 = vadd.f32 %v4413_v26, %v3359_v38 }
 0xb21   : > { %v3452_v28 = vpop.f32.mrf.mxu1 }
 0xb22   : > { %v3485_v58 = vmax.f32 %v3461_v48, 0.0  ;;  %v3453_v59 = vadd.f32 %v3452_v28, %v3349_v57 }
 0xb23   : > { %v4414_v29 = vpop.f32.mrf.mxu1 }
 0xb24   : > { %v3464_v40 = vadd.f32 %v4414_v29, %v3364_v35  ;;  %v3483_v62 = vmax.f32 %v3453_v59, 0.0 }
 0xb25   : > { %v3455_v30 = vpop.f32.mrf.mxu1 }
 0xb26   : > { %v3486_v54 = vmax.f32 %v3464_v40, 0.0  ;;  %v3456_v55 = vadd.f32 %v3455_v30, %v3354_v53  ;;  %v4781_v53 = vld [vmem:[%s5566_s21 + $0x8] sm:$0xff]  }
 0xb27   : > { %v4417_v32 = vpop.f32.mrf.mxu1 }
 0xb28   : > { %v3477_v34 = vadd.f32 %v4417_v32, %v3379_v27  ;;  %v3492_v60 = vpack.c.bf16 %v3486_v54, %v3485_v58  ;;  %v3484_v61 = vmax.f32 %v3456_v55, 0.0  ;;  %v3765_v55 = vpop.permute.xlu0 %3764 }
 0xb29   : > { %v3468_v33 = vpop.f32.mrf.mxu1 }
 0xb2a   : > { %v3469_v37 = vadd.f32 %v3468_v33, %v3369_v31  ;;  %v3489_v41 = vmax.f32 %v3477_v34, 0.0  ;;  %v3491_v0 = vpack.c.bf16 %v3484_v61, %v3483_v62 }
 0xb2b   : > { %v4418_v36 = vpop.f32.mrf.mxu1 }
 0xb2c   : > { %v3480_v50 = vadd.f32 %v4418_v36, %v3384_v46  ;;  %v3487_v49 = vmax.f32 %v3469_v37, 0.0  ;;  %v3544_v46 = vpop.permute.xlu1 %3543  ;;  %v4780_v36 = vld [vmem:[%s5566_s21] sm:$0xff]   ;;  %v3775_v62 = vpop.permute.xlu0 %3774 }
 0xb2d   : > { %v3471_v39 = vpop.f32.mrf.mxu1 }
 0xb2e   : > { %v3490_v44 = vmax.f32 %v3480_v50, 0.0  ;;  %v3472_v47 = vadd.f32 %v3471_v39, %v3374_v3 }
 0xb30   : > { %v3494_v51 = vpack.c.bf16 %v3490_v44, %v3489_v41  ;;  %v3488_v52 = vmax.f32 %v3472_v47, 0.0  ;;  %v3760_v54 = vpop.permute.xlu1 %3759 }
 0xb32   : > { %v3493_v56 = vpack.c.bf16 %v3488_v52, %v3487_v49  ;;  %4419 = vmatprep.subr.bf16.mxu0 %v3494_v51 }
 0xb33   : > { %4420 = vmatpush3.bf16.msra.mxu0 %v3494_v51 }
 0xb34   : > { %4421 = vmatprep.subr.bf16.mxu0 %v3493_v56 }
 0xb37   : > { %4422 = vmatpush3.bf16.msra.mxu0 %v3493_v56  ;;  %v3770_v56 = vpop.permute.xlu1 %3769 }
 0xb38   : > { %4423 = vmatprep.subr.bf16.mxu0 %v3492_v60 }
 0xb3b   : > { %4424 = vmatpush3.bf16.msra.mxu0 %v3492_v60 }
 0xb3c   : > { %4425 = vmatprep.subr.bf16.mxu0 %v3491_v0 }
 0xb3f   : > { %4426 = vmatpush3.bf16.msra.mxu0 %v3491_v0 }
 0xb42   : > { %4428 = vmatmul.mubr.msk.bf16.vlgmr.msra.gmra.mxu0 %vm2554_vm6, %v4776_v1 }
 0xb43   : > { %4431 = vmatprep.mubr.msk.bf16.mxu0 %vm2554_vm6, %v4777_v4 }
 0xb4a   : > { %4432 = vmatmul.mubr.msk.bf16.gmra.mxu0 %vm2554_vm6, %v4778_v5 }
 0xb4b   : > { %4453 = vmatprep.mubr.msk.bf16.mxu0 %vm2554_vm6, %v4780_v36 }
 0xc02   : > { %v4429_v10 = vpop.f32.mrf.mxu0 }
 0xc03   : > { %v3626_v15 = vadd.f32 %v4429_v10, %v3524_v11 }
 0xc04   : > { %v3617_v2 = vpop.f32.mrf.mxu0 }
 0xc05   : > { %v3618_v13 = vadd.f32 %v3617_v2, %v3514_v8  ;;  %v3650_v22 = vmax.f32 %v3626_v15, 0.0 }
 0xc06   : > { %v4430_v12 = vpop.f32.mrf.mxu0 }
 0xc07   : > { %v3629_v24 = vadd.f32 %v4430_v12, %v3529_v9  ;;  %v3648_v20 = vmax.f32 %v3618_v13, 0.0 }
 0xc08   : > { %v3620_v16 = vpop.f32.mrf.mxu0 }
 0xc09   : > { %v3621_v63 = vadd.f32 %v3620_v16, %v3519_v7  ;;  %v3651_v18 = vmax.f32 %v3629_v24, 0.0 }
 0xc0a   : > { %v4433_v19 = vpop.f32.mrf.mxu0 }
 0xc0b   : > { %v3649_v21 = vmax.f32 %v3621_v63, 0.0  ;;  %v3657_v43 = vpack.c.bf16 %v3651_v18, %v3650_v22  ;;  %v3642_v28 = vadd.f32 %v4433_v19, %v3544_v46 }
 0xc0c   : > { %v3633_v23 = vpop.f32.mrf.mxu0 }
 0xc0d   : > { %v3656_v25 = vpack.c.bf16 %v3649_v21, %v3648_v20  ;;  %v3634_v26 = vadd.f32 %v3633_v23, %v3534_v17  ;;  %v3654_v33 = vmax.f32 %v3642_v28, 0.0 }
 0xc0e   : > { %v4434_v45 = vpop.f32.mrf.mxu0 }
 0xc0f   : > { %v3645_v27 = vadd.f32 %v4434_v45, %v3549_v42  ;;  %4437 = vmatprep.mubr.msk.bf16.mxu1 %vm2329_vm4, %v3656_v25  ;;  %v3652_v31 = vmax.f32 %v3634_v26, 0.0 }
 0xc10   : > { %v3636_v29 = vpop.f32.mrf.mxu0  ;;  %4438 = vmatmul.mubr.msk.bf16.vlgmr.msra.gmra.mxu1 %vm2329_vm4, %v3657_v43 }
 0xc11   : > { %v3637_v3 = vadd.f32 %v3636_v29, %v3539_v14  ;;  %v3655_v30 = vmax.f32 %v3645_v27, 0.0 }
 0xc13   : > { %v3653_v32 = vmax.f32 %v3637_v3, 0.0  ;;  %v3659_v35 = vpack.c.bf16 %v3655_v30, %v3654_v33 }
 0xc15   : > { %v3658_v34 = vpack.c.bf16 %v3653_v32, %v3652_v31 }
 0xc17   : > { %4441 = vmatprep.mubr.msk.bf16.mxu1 %vm2329_vm4, %v3658_v34 }
 0xc18   : > { %4442 = vmatmul.mubr.msk.bf16.gmra.mxu1 %vm2329_vm4, %v3659_v35 }
 0xcd0   : > { %v4439_v37 = vpop.f32.mrf.mxu1 }
 0xcd2   : > { %v3714_v50 = vpop.f32.mrf.mxu1 }
 0xcd4   : > { %v4440_v38 = vpop.f32.mrf.mxu1 }
 0xcd5   : > { %v3746_v51 = vpack.c.bf16 %v4440_v38, %v4439_v37 }
 0xcd6   : > { %v3717_v39 = vpop.f32.mrf.mxu1 }
 0xcd7   : > { %v3745_v52 = vpack.c.bf16 %v3717_v39, %v3714_v50 }
 0xcd8   : > { %v4443_v40 = vpop.f32.mrf.mxu1 }
 0xcda   : > { %v3730_v41 = vpop.f32.mrf.mxu1 }
 0xcdc   : > { %v4444_v44 = vpop.f32.mrf.mxu1 }
 0xcdd   : > { %v3748_v47 = vpack.c.bf16 %v4444_v44, %v4443_v40 }
 0xcde   : > { %v3733_v48 = vpop.f32.mrf.mxu1 }
 0xcdf   : > { %v3747_v49 = vpack.c.bf16 %v3733_v48, %v3730_v41  ;;  %4445 = vmatprep.subr.bf16.mxu0 %v3748_v47 }
 0xce0   : > { %4446 = vmatpush3.bf16.msra.mxu0 %v3748_v47 }
 0xce1   : > { %4447 = vmatprep.subr.bf16.mxu0 %v3747_v49 }
 0xce4   : > { %4448 = vmatpush3.bf16.msra.mxu0 %v3747_v49 }
 0xce5   : > { %4449 = vmatprep.subr.bf16.mxu0 %v3746_v51 }
 0xce8   : > { %4450 = vmatpush3.bf16.msra.mxu0 %v3746_v51 }
 0xce9   : > { %4451 = vmatprep.subr.bf16.mxu0 %v3745_v52 }
 0xcec   : > { %4452 = vmatpush3.bf16.msra.mxu0 %v3745_v52 }
 0xcef   : > { %4454 = vmatmul.mubr.msk.bf16.vlgmr.msra.gmra.mxu0 %vm2554_vm6, %v4781_v53 }
 0xdaf   : > { %v4455_v57 = vpop.f32.mrf.mxu0 }
 0xdb0   : > { %v3836_v58 = vadd.f32 %v4455_v57, %v3770_v56 }
 0xdb1   : > { %v3827_v59 = vpop.f32.mrf.mxu0 }
 0xdb2   : > { %v3844_v60 = vadd.f32 3.0, %v3836_v58  ;;  %v3828_v61 = vadd.f32 %v3827_v59, %v3760_v54 }
 0xdb3   : > { %v4456_v0 = vpop.f32.mrf.mxu0 }
 0xdb4   : > { %v3848_v1 = vmax.f32 %v3844_v60, 0.0  ;;  %v3842_v4 = vadd.f32 3.0, %v3828_v61  ;;  %v3839_v5 = vadd.f32 %v4456_v0, %v3775_v62 }
 0xdb5   : > { %v3830_v6 = vpop.f32.mrf.mxu0 }
 0xdb6   : > { %v3852_v7 = vmin.f32 %v3848_v1, 6.0  ;;  %v3846_v8 = vmax.f32 %v3842_v4, 0.0  ;;  %v3845_v9 = vadd.f32 3.0, %v3839_v5  ;;  %v3831_v10 = vadd.f32 %v3830_v6, %v3765_v55 }
 0xdb8   : > { %v3850_v11 = vmin.f32 %v3846_v8, 6.0  ;;  %v3849_v2 = vmax.f32 %v3845_v9, 0.0  ;;  %v3843_v12 = vadd.f32 3.0, %v3831_v10  ;;  %v3856_v13 = vmul.f32 %v3852_v7, %v3836_v58 }
 0xdba   : > { %v3854_v24 = vmul.f32 %v3850_v11, %v3828_v61  ;;  %v3853_v14 = vmin.f32 %v3849_v2, 6.0  ;;  %v3847_v15 = vmax.f32 %v3843_v12, 0.0  ;;  %v3860_v18 = vmul.f32 0.16666667, %v3856_v13 }
 0xdbc   : > { %v3858_v16 = vmul.f32 0.16666667, %v3854_v24  ;;  %v3857_v17 = vmul.f32 %v3853_v14, %v3839_v5  ;;  %v3851_v63 = vmin.f32 %v3847_v15, 6.0  ;;  %v3864_v23 = vmul.f32 %v3860_v18, %v3860_v18 }
 0xdbe   : > { %v3855_v19 = vmul.f32 %v3851_v63, %v3831_v10  ;;  %v3862_v20 = vmul.f32 %v3858_v16, %v3858_v16  ;;  %v3861_v21 = vmul.f32 0.16666667, %v3857_v17  ;;  %v3870_v26 = vsel %vm3866_vm8, %v3864_v23, 0.0 }
 0xdc0   : > { %v3859_v22 = vmul.f32 0.16666667, %v3855_v19  ;;  %v3867_v42 = vsel %vm3866_vm8, %v3862_v20, 0.0  ;;  %v3865_v43 = vmul.f32 %v3861_v21, %v3861_v21 }
 0xdc2   : > { %v3863_v25 = vmul.f32 %v3859_v22, %v3859_v22  ;;  %v3872_v28 = vsel %vm3866_vm8, %v3865_v43, 0.0 }
 0xdc4   : > { %v3868_v45 = vsel %vm3866_vm8, %v3863_v25, 0.0 }
 0xdc5   : > { %v3869_v46 = vadd.f32 %v3868_v45, %v3867_v42 }
 0xdc7   : > { %v3871_v27 = vadd.f32 %v3870_v26, %v3869_v46 }
 0xdc9   : > { %v3873_v29 = vadd.f32 %v3872_v28, %v3871_v27 }
 0xdcb   : > { %v3874_v3 = vrot.slane %v3873_v29, 4 }
 0xdcd   : > { %v3875_v30 = vadd.f32 %v3874_v3, %v3873_v29 }
 0xdcf   : > { %v3876_v31 = vrot.slane %v3875_v30, 2 }
 0xdd1   : > { %v3877_v32 = vadd.f32 %v3876_v31, %v3875_v30 }
 0xdd3   : > { %v3878_v33 = vrot.slane %v3877_v32, 1 }
 0xdd5   : > { %v3879_v34 = vadd.f32 %v3878_v33, %v3877_v32 }
 0xdd7   : > { %4802 = vrsqrt.f32 %v3879_v34  ;;  %vm3882_vm9 = vcmp.eq.f32.partialorder %v3879_v34, inf  ;;  %v3885_v37 = vand.u32 2147483648, %v3879_v34  ;;  %vm3884_vm10 = vcmp.eq.f32.partialorder %v3879_v34, 0.0 }
 0xde4   : > { %v4803_v35 = vpop.eup %4802 }
 0xde5   : > { %v3881_v36 = vmul.f32 %v4803_v35, %v3879_v34 }
 0xde7   : > { %v3883_v50 = vsel %vm3882_vm9, %v3879_v34, %v3881_v36 }
 0xde8   : > { %v3886_v38 = vsel %vm3884_vm10, %v3885_v37, %v3883_v50 }
 0xde9   : > { %v3887_v39 = vmax.f32 %v3886_v38, 1e-12 }
 0xdeb   : > { %4804 = vrcp.f32 %v3887_v39 }
 0xdf8   : > { %v4805_v40 = vpop.eup %4804 }
 0xdf9   : > { %v3889_v41 = vmul.f32 %v4805_v40, %v3858_v16  ;;  %v3890_v44 = vmul.f32 %v4805_v40, %v3859_v22  ;;  %v3891_v47 = vmul.f32 %v4805_v40, %v3860_v18  ;;  %v3892_v48 = vmul.f32 %v4805_v40, %v3861_v21 }
 0xdfb   : > { %3893 = vst.msk [vmem:[%s710_s5] sm:$0xff] %vm3866_vm8, %v3889_v41  ;;  %3894 = vst.msk [vmem:[%s710_s5 + $0x8] sm:$0xff] %vm3866_vm8, %v3890_v44 }
 0xdfc   : > { %3895 = vst.msk [vmem:[%s710_s5 + $0x10] sm:$0xff] %vm3866_vm8, %v3891_v47  ;;  %3896 = vst.msk [vmem:[%s710_s5 + $0x18] sm:$0xff] %vm3866_vm8, %v3892_v48 }
 0xdfd PF: > { %s33_s4 = sadd.s32 1, %s4812_s4  }
 0xdfe   : > { %p30_p4 = scmp.ge.s32.totalorder %s33_s4, 4  }
 0xe00   :  { %32 = sbr.rel (!%p30_p4) target bundleno = 9 (0x9), region = 142 }

</bundles_post_ra>
